<compile_context>
chip_gen: v7x
topology: tpu7x:2x2x1
jax: 0.10.0
libtpu: 0.0.40
codegen_flags: <defaults>
</compile_context>

<pallas_src>
import jax
import jax.numpy as jnp
from jax import lax
from jax.experimental import pallas as pl
from jax.experimental.pallas import tpu as pltpu

IN_DIM = 7
HID = 256
OUT_DIM = 2


def _round_up(x, m):
    return ((x + m - 1) // m) * m


def mlp_kernel(x_ref, w1_ref, b1_ref, w2_ref, b2_ref, w3_ref, b3_ref,
               w4t_ref, b4_ref, ot_ref):
    """Fused 4-layer MLP on one batch tile.

    Matmul operands are cast to the weight dtype (f32 or bf16) right before
    each dot; the MXU accumulates in f32 and all elementwise work (bias add,
    ReLU) stays in f32.
    """
    wd = w1_ref.dtype

    # Layer 1: (TB, 7) @ (7, 256) -> bias -> ReLU  (Mosaic pads K=7 in-layout)
    h = jnp.dot(x_ref[...].astype(wd), w1_ref[...],
                preferred_element_type=jnp.float32)
    h = jnp.maximum(h + b1_ref[...], 0.0)

    # Layer 2: (TB, 256) @ (256, 256) -> bias -> ReLU
    h = jnp.dot(h.astype(wd), w2_ref[...], preferred_element_type=jnp.float32)
    h = jnp.maximum(h + b2_ref[...], 0.0)

    # Layer 3: (TB, 256) @ (256, 256) -> bias -> ReLU
    h = jnp.dot(h.astype(wd), w3_ref[...], preferred_element_type=jnp.float32)
    h = jnp.maximum(h + b3_ref[...], 0.0)

    # Layer 4 (logits, no activation), lane-dense transposed output:
    # (2, 256) x (TB, 256) contracted on 256 -> (2, TB)
    logits_t = lax.dot_general(
        w4t_ref[...], h.astype(wd),
        dimension_numbers=(((1,), (1,)), ((), ())),
        preferred_element_type=jnp.float32)
    ot_ref[...] = logits_t + b4_ref[...]


def mlp_forward(x, params, *, tile_b=1024, use_bf16=True):
    """x: (B, ...) flattened to (B, 7). Returns logits (B, 2) float32."""
    w1, b1, w2, b2, w3, b3, w4, b4 = params

    # nn.Flatten equivalent
    x = x.reshape(x.shape[0], -1)
    B, feat = x.shape
    assert feat == IN_DIM, f"expected {IN_DIM} features after flatten, got {feat}"

    # ---- batch-tile selection ----
    #  * tile_b >= B  -> single grid step with full-extent blocks (any B legal)
    #  * tile_b <  B  -> round to a multiple of 128 (lane dim of the (2, B)
    #    transposed output; also satisfies the 8-sublane rule for x)
    #  * keep >= 2 grid steps when B is large enough so both v7x TensorCores
    #    get work under dimension_semantics=("parallel",)
    tile_b = int(tile_b)
    if B >= 2 * 128:
        tile_b = min(tile_b, _round_up(pl.cdiv(B, 2), 128))
    if tile_b >= B:
        tile_b = B
    else:
        tile_b = _round_up(tile_b, 128)
    grid = (pl.cdiv(B, tile_b),)

    # ---- parameter prep (layout only; no extra pass over x) ----
    wdtype = jnp.bfloat16 if use_bf16 else jnp.float32
    w1_k = w1.astype(wdtype)
    w2_k = w2.astype(wdtype)
    w3_k = w3.astype(wdtype)
    w4t_k = w4.T.astype(wdtype)               # (2, 256) for the lane-dense last layer
    b1_r = b1.reshape(1, HID).astype(jnp.float32)
    b2_r = b2.reshape(1, HID).astype(jnp.float32)
    b3_r = b3.reshape(1, HID).astype(jnp.float32)
    b4_r = b4.reshape(OUT_DIM, 1).astype(jnp.float32)

    # Activation blocks march over the batch; parameter blocks are constant
    # (same block every step -> fetched once, stay VMEM-resident).
    x_spec = pl.BlockSpec((tile_b, IN_DIM), lambda i: (i, 0))
    w1_spec = pl.BlockSpec((IN_DIM, HID), lambda i: (0, 0))
    bh_spec = pl.BlockSpec((1, HID), lambda i: (0, 0))
    wh_spec = pl.BlockSpec((HID, HID), lambda i: (0, 0))
    w4t_spec = pl.BlockSpec((OUT_DIM, HID), lambda i: (0, 0))
    b4_spec = pl.BlockSpec((OUT_DIM, 1), lambda i: (0, 0))
    out_spec = pl.BlockSpec((OUT_DIM, tile_b), lambda i: (0, i))

    inputs = (x, w1_k, b1_r, w2_k, b2_r, w3_k, b3_r, w4t_k, b4_r)

    flops = 2 * B * (IN_DIM * HID + HID * HID + HID * HID + HID * OUT_DIM)
    bytes_accessed = (sum(int(a.size) * a.dtype.itemsize for a in inputs)
                      + B * OUT_DIM * 4)

    logits_t = pl.pallas_call(
        mlp_kernel,
        out_shape=jax.ShapeDtypeStruct((OUT_DIM, B), jnp.float32),
        grid=grid,
        in_specs=[x_spec,
                  w1_spec, bh_spec,
                  wh_spec, bh_spec,
                  wh_spec, bh_spec,
                  w4t_spec, b4_spec],
        out_specs=out_spec,
        compiler_params=pltpu.CompilerParams(
            dimension_semantics=("parallel",)),
        cost_estimate=pl.CostEstimate(
            flops=flops, transcendentals=0, bytes_accessed=bytes_accessed),
    )(*inputs)

    # Cheap XLA transpose back to the PyTorch (B, 2) layout.
    return logits_t.T


def init_params(key):
    """Deterministic init matching the PyTorch layer shapes (stored as (in, out))."""
    ks = jax.random.split(key, 8)

    def linear(kw, kb, fan_in, fan_out):
        # PyTorch default: U(-1/sqrt(fan_in), 1/sqrt(fan_in))
        bound = 1.0 / jnp.sqrt(fan_in)
        w = jax.random.uniform(kw, (fan_in, fan_out), jnp.float32, -bound, bound)
        b = jax.random.uniform(kb, (fan_out,), jnp.float32, -bound, bound)
        return w, b

    w1, b1 = linear(ks[0], ks[1], IN_DIM, HID)
    w2, b2 = linear(ks[2], ks[3], HID, HID)
    w3, b3 = linear(ks[4], ks[5], HID, HID)
    w4, b4 = linear(ks[6], ks[7], HID, OUT_DIM)
    return (w1, b1, w2, b2, w3, b3, w4, b4)


def reference_forward(x, params):
    w1, b1, w2, b2, w3, b3, w4, b4 = params
    x = x.reshape(x.shape[0], -1)
    h = jnp.maximum(x @ w1 + b1, 0.0)
    h = jnp.maximum(h @ w2 + b2, 0.0)
    h = jnp.maximum(h @ w3 + b3, 0.0)
    return h @ w4 + b4


if __name__ == "__main__":
    key = jax.random.PRNGKey(0)
    k_x, k_p = jax.random.split(key)

    B = 512  # two 256-row grid steps -> exercises tiling + v7x parallel split
    x = jax.random.normal(k_x, (B, IN_DIM), dtype=jnp.float32)
    params = init_params(k_p)

    ref = reference_forward(x, params)

    # f32-operand path: tight parity with the jnp reference.
    logits_f32 = mlp_forward(x, params, tile_b=1024, use_bf16=False)
    jax.block_until_ready(logits_f32)
    assert logits_f32.shape == (B, OUT_DIM)
    assert jnp.allclose(logits_f32, ref, atol=1e-4, rtol=1e-4)

    # bf16-operand fast path (v6e/v7x MXU native rate): looser tolerance.
    logits_bf16 = mlp_forward(x, params, tile_b=1024, use_bf16=True)
    jax.block_until_ready(logits_bf16)
    assert logits_bf16.shape == (B, OUT_DIM)
    assert jnp.allclose(logits_bf16, ref, atol=5e-2, rtol=5e-2)

    print("KERNEL_OK")
</pallas_src>

<mosaic_0001>
module attributes {stable_mosaic.version = 11 : i64} {
  func.func @mlp_kernel(%arg0: i32, %arg1: memref<256x7xf32, #tpu.memory_space<vmem>>, %arg2: memref<7x256xf32, #tpu.memory_space<vmem>>, %arg3: memref<1x256xf32, #tpu.memory_space<vmem>>, %arg4: memref<256x256xf32, #tpu.memory_space<vmem>>, %arg5: memref<1x256xf32, #tpu.memory_space<vmem>>, %arg6: memref<256x256xf32, #tpu.memory_space<vmem>>, %arg7: memref<1x256xf32, #tpu.memory_space<vmem>>, %arg8: memref<2x256xf32, #tpu.memory_space<vmem>>, %arg9: memref<2x1xf32, #tpu.memory_space<vmem>>, %arg10: memref<2x256xf32, #tpu.memory_space<vmem>>) attributes {dimension_semantics = [#tpu.dimension_semantics<parallel>], iteration_bounds = array<i64: 2>, scalar_prefetch = 0 : i64, scratch_operands = 0 : i64, tpu.core_type = #tpu.core_type<tc>, window_params = [{transform_indices = @transform_0, window_bounds = array<i64: 256, 7>}, {pipeline_mode = #tpu.pipeline_mode<synchronous>, transform_indices = @transform_1, window_bounds = array<i64: 7, 256>}, {pipeline_mode = #tpu.pipeline_mode<synchronous>, transform_indices = @transform_2, window_bounds = array<i64: 1, 256>}, {pipeline_mode = #tpu.pipeline_mode<synchronous>, transform_indices = @transform_3, window_bounds = array<i64: 256, 256>}, {pipeline_mode = #tpu.pipeline_mode<synchronous>, transform_indices = @transform_4, window_bounds = array<i64: 1, 256>}, {pipeline_mode = #tpu.pipeline_mode<synchronous>, transform_indices = @transform_5, window_bounds = array<i64: 256, 256>}, {pipeline_mode = #tpu.pipeline_mode<synchronous>, transform_indices = @transform_6, window_bounds = array<i64: 1, 256>}, {pipeline_mode = #tpu.pipeline_mode<synchronous>, transform_indices = @transform_7, window_bounds = array<i64: 2, 256>}, {pipeline_mode = #tpu.pipeline_mode<synchronous>, transform_indices = @transform_8, window_bounds = array<i64: 2, 1>}, {transform_indices = @transform_9, window_bounds = array<i64: 2, 256>}]} {
    %c0 = arith.constant 0 : index
    %c0_0 = arith.constant 0 : index
    %0 = vector.load %arg1[%c0, %c0_0] : memref<256x7xf32, #tpu.memory_space<vmem>>, vector<256x7xf32>
    %c0_1 = arith.constant 0 : index
    %c0_2 = arith.constant 0 : index
    %1 = vector.load %arg2[%c0_1, %c0_2] : memref<7x256xf32, #tpu.memory_space<vmem>>, vector<7x256xf32>
    %cst = arith.constant dense<0.000000e+00> : vector<256x256xf32>
    %2 = tpu.matmul %0, %1, %cst {dimension_numbers = #tpu.dot_dimension_numbers<[1], [0], [0], [1], [0, 0, 1, 1], [], []>} : vector<256x7xf32>, vector<7x256xf32>, vector<256x256xf32> -> vector<256x256xf32>
    %c0_3 = arith.constant 0 : index
    %c0_4 = arith.constant 0 : index
    %3 = vector.load %arg3[%c0_3, %c0_4] : memref<1x256xf32, #tpu.memory_space<vmem>>, vector<1x256xf32>
    %4 = vector.broadcast %3 : vector<1x256xf32> to vector<256x256xf32>
    %5 = arith.addf %2, %4 : vector<256x256xf32>
    %cst_5 = arith.constant 0.000000e+00 : f32
    %6 = vector.broadcast %cst_5 : f32 to vector<256x256xf32>
    %7 = arith.maximumf %5, %6 : vector<256x256xf32>
    %c0_6 = arith.constant 0 : index
    %c0_7 = arith.constant 0 : index
    %8 = vector.load %arg4[%c0_6, %c0_7] : memref<256x256xf32, #tpu.memory_space<vmem>>, vector<256x256xf32>
    %cst_8 = arith.constant dense<0.000000e+00> : vector<256x256xf32>
    %9 = tpu.matmul %7, %8, %cst_8 {dimension_numbers = #tpu.dot_dimension_numbers<[1], [0], [0], [1], [0, 0, 1, 1], [], []>} : vector<256x256xf32>, vector<256x256xf32>, vector<256x256xf32> -> vector<256x256xf32>
    %c0_9 = arith.constant 0 : index
    %c0_10 = arith.constant 0 : index
    %10 = vector.load %arg5[%c0_9, %c0_10] : memref<1x256xf32, #tpu.memory_space<vmem>>, vector<1x256xf32>
    %11 = vector.broadcast %10 : vector<1x256xf32> to vector<256x256xf32>
    %12 = arith.addf %9, %11 : vector<256x256xf32>
    %cst_11 = arith.constant 0.000000e+00 : f32
    %13 = vector.broadcast %cst_11 : f32 to vector<256x256xf32>
    %14 = arith.maximumf %12, %13 : vector<256x256xf32>
    %c0_12 = arith.constant 0 : index
    %c0_13 = arith.constant 0 : index
    %15 = vector.load %arg6[%c0_12, %c0_13] : memref<256x256xf32, #tpu.memory_space<vmem>>, vector<256x256xf32>
    %cst_14 = arith.constant dense<0.000000e+00> : vector<256x256xf32>
    %16 = tpu.matmul %14, %15, %cst_14 {dimension_numbers = #tpu.dot_dimension_numbers<[1], [0], [0], [1], [0, 0, 1, 1], [], []>} : vector<256x256xf32>, vector<256x256xf32>, vector<256x256xf32> -> vector<256x256xf32>
    %c0_15 = arith.constant 0 : index
    %c0_16 = arith.constant 0 : index
    %17 = vector.load %arg7[%c0_15, %c0_16] : memref<1x256xf32, #tpu.memory_space<vmem>>, vector<1x256xf32>
    %18 = vector.broadcast %17 : vector<1x256xf32> to vector<256x256xf32>
    %19 = arith.addf %16, %18 : vector<256x256xf32>
    %cst_17 = arith.constant 0.000000e+00 : f32
    %20 = vector.broadcast %cst_17 : f32 to vector<256x256xf32>
    %21 = arith.maximumf %19, %20 : vector<256x256xf32>
    %c0_18 = arith.constant 0 : index
    %c0_19 = arith.constant 0 : index
    %22 = vector.load %arg8[%c0_18, %c0_19] : memref<2x256xf32, #tpu.memory_space<vmem>>, vector<2x256xf32>
    %cst_20 = arith.constant dense<0.000000e+00> : vector<2x256xf32>
    %23 = tpu.matmul %22, %21, %cst_20 {dimension_numbers = #tpu.dot_dimension_numbers<[1], [1], [0], [0], [0, 0, 1, 0], [], []>} : vector<2x256xf32>, vector<256x256xf32>, vector<2x256xf32> -> vector<2x256xf32>
    %c0_21 = arith.constant 0 : index
    %c0_22 = arith.constant 0 : index
    %24 = vector.load %arg9[%c0_21, %c0_22] : memref<2x1xf32, #tpu.memory_space<vmem>>, vector<2x1xf32>
    %25 = vector.broadcast %24 : vector<2x1xf32> to vector<2x256xf32>
    %26 = arith.addf %23, %25 : vector<2x256xf32>
    %c0_23 = arith.constant 0 : index
    %c0_24 = arith.constant 0 : index
    %27 = vector.load %arg10[%c0_23, %c0_24] : memref<2x256xf32, #tpu.memory_space<vmem>>, vector<2x256xf32>
    tpu.vector_store %arg10[%c0_23, %c0_24], %26 {strides = array<i32>} : memref<2x256xf32, #tpu.memory_space<vmem>>, vector<2x256xf32>,
    return
  }
  func.func @transform_0(%arg0: i32) -> (i32, i32) {
    %c0_i32 = arith.constant 0 : i32
    %c0_i32_0 = arith.constant 0 : i32
    return %arg0, %c0_i32 : i32, i32
  }
  func.func @transform_1(%arg0: i32) -> (i32, i32) {
    %c0_i32 = arith.constant 0 : i32
    %c0_i32_0 = arith.constant 0 : i32
    %c0_i32_1 = arith.constant 0 : i32
    return %c0_i32, %c0_i32_0 : i32, i32
  }
  func.func @transform_2(%arg0: i32) -> (i32, i32) {
    %c0_i32 = arith.constant 0 : i32
    %c0_i32_0 = arith.constant 0 : i32
    %c0_i32_1 = arith.constant 0 : i32
    return %c0_i32, %c0_i32_0 : i32, i32
  }
  func.func @transform_3(%arg0: i32) -> (i32, i32) {
    %c0_i32 = arith.constant 0 : i32
    %c0_i32_0 = arith.constant 0 : i32
    %c0_i32_1 = arith.constant 0 : i32
    return %c0_i32, %c0_i32_0 : i32, i32
  }
  func.func @transform_4(%arg0: i32) -> (i32, i32) {
    %c0_i32 = arith.constant 0 : i32
    %c0_i32_0 = arith.constant 0 : i32
    %c0_i32_1 = arith.constant 0 : i32
    return %c0_i32, %c0_i32_0 : i32, i32
  }
  func.func @transform_5(%arg0: i32) -> (i32, i32) {
    %c0_i32 = arith.constant 0 : i32
    %c0_i32_0 = arith.constant 0 : i32
    %c0_i32_1 = arith.constant 0 : i32
    return %c0_i32, %c0_i32_0 : i32, i32
  }
  func.func @transform_6(%arg0: i32) -> (i32, i32) {
    %c0_i32 = arith.constant 0 : i32
    %c0_i32_0 = arith.constant 0 : i32
    %c0_i32_1 = arith.constant 0 : i32
    return %c0_i32, %c0_i32_0 : i32, i32
  }
  func.func @transform_7(%arg0: i32) -> (i32, i32) {
    %c0_i32 = arith.constant 0 : i32
    %c0_i32_0 = arith.constant 0 : i32
    %c0_i32_1 = arith.constant 0 : i32
    return %c0_i32, %c0_i32_0 : i32, i32
  }
  func.func @transform_8(%arg0: i32) -> (i32, i32) {
    %c0_i32 = arith.constant 0 : i32
    %c0_i32_0 = arith.constant 0 : i32
    %c0_i32_1 = arith.constant 0 : i32
    return %c0_i32, %c0_i32_0 : i32, i32
  }
  func.func @transform_9(%arg0: i32) -> (i32, i32) {
    %c0_i32 = arith.constant 0 : i32
    %c0_i32_0 = arith.constant 0 : i32
    return %c0_i32, %arg0 : i32, i32
  }
}

</mosaic_0001>

<bundles_post_ra>
// kernel: tpu_custom_call.1
= control target key start
LH: loop header
LB: loop body
LE: loop exit
PB: predicated region body
PF: predicated region fallthrough
CT: control target
= control target key end

     0   :  { %14 = vsyncpa [#allocation3], 0  ;;  %s3013_s0 = inlined_call_operand.vmem [shape: f32[512,7], index: 0, kind: input, shape index: {}]   ;;  %s3014_s1 = inlined_call_operand.vmem [shape: f32[7,256], index: 1, kind: input, shape index: {}]   ;;  %s3015_s2 = inlined_call_operand.vmem [shape: f32[1,256], index: 2, kind: input, shape index: {}]   ;;  %s3016_s3 = inlined_call_operand.vmem [shape: f32[256,256], index: 3, kind: input, shape index: {}]   ;;  %s3017_s4 = inlined_call_operand.vmem [shape: f32[1,256], index: 4, kind: input, shape index: {}]   ;;  %s3018_s5 = inlined_call_operand.hbm [shape: f32[256,256], index: 5, kind: input, shape index: {}]   ;;  %s3019_s6 = inlined_call_operand.vmem [shape: f32[1,256], index: 6, kind: input, shape index: {}]   ;;  %s3020_s7 = inlined_call_operand.vmem [shape: f32[2,256], index: 7, kind: input, shape index: {}]   ;;  %s3021_s8 = inlined_call_operand.vmem [shape: f32[2,1], index: 8, kind: input, shape index: {}]   ;;  %s3022_s9 = inlined_call_operand.hbm [shape: f32[2,512], index: 9, kind: output, shape index: {}]  }
   0x1   :  { %15 = vsyncpa [#allocation4], 0 }
   0x2   :  { %17 = vsyncpa [#allocation4 + $0x1], 0  ;;  %s2253_s30 = smov 0   ;;  %s2255_s10 = smov 0  }
   0x3   :  { %s2257_s11 = smov 0   ;;  %s2259_s12 = smov 0  }
   0x4 LB: > { %s2274_s13 = sadd.s32 4294967295, %s2195_s12   ;;  %s1801_s14 = sadd.s32 4294967294, %s2195_s12   ;;  %s2195_s12 = sphi %s2259_s12, %s3038_s12   ;;  %s2191_s11 = sphi %s2257_s11, %s3037_s11   ;;  %s2187_s10 = sphi %s2255_s10, %s3036_s10   ;;  %s2183_s30 = sphi %s2253_s30, %s3035_s30  }
   0x5   : > { %s2278_s15 = sadd.s32 1, %s2195_s12   ;;  %s224_s16 = sadd.s32 1, %s2191_s11 }
   0x6   : > { %s221_s17 = ssub.s32 %s2195_s12, %s2278_s15  ;;  %p234_p0 = scmp.ne.s32.totalorder %s2191_s11, %s2187_s10 }
   0x7   : > { %p222_p1 = scmp.eq.s32.totalorder %s221_s17, 0  ;;  %p235_p2 = scmp.eq.s32.totalorder %s2274_s13, 1 }
   0x8   : > { %p240_p3 = scmp.ne.s32.totalorder %s2187_s10, %s2183_s30  ;;  %p241_p4 = scmp.eq.s32.totalorder %s1801_s14, 1 }
   0x9   : > { %s2289_s18 = scalar_select %p222_p1, %s2191_s11, %s224_s16  }
   0xa   : > { %p2291_p5 = por %p235_p2, %p234_p0  ;;  %p2295_p6 = por %p241_p4, %p240_p3 }
   0xb   : > { %p1802_p7 = scmp.ge.s32.totalorder %s2195_s12, 1  ;;  %p248_p8 = scmp.lt.s32.totalorder %s2195_s12, 3 }
   0xc   : > { %s3026_s19 = scalar_select %p2291_p5, 1, 0 }
   0xd   : > { %s3027_s20 = scalar_select %p2295_p6, 1, 0 }
   0xe   : > { %p3023_p9 = scmp.eq.s32.totalorder %s2274_s13, 0  ;;  %p2302_p10 = pnand %p1802_p7, %p248_p8 }
   0xf   : > { %s2197_s22 = smov [#allocation2]   ;;  %s2101_s27 = scalar_lea.hbm %s3018_s5, 8192 }
  0x10   : > { %s3028_s21 = scalar_select %p2302_p10, 1, 0 }
  0x11   : > { %s272_s23 = sshll.u32 %s2197_s22, 4  ;;  %p2052_p11 = pneg %p2302_p10  ;;  %s273_s23 = int_to_ptr.vmem [resolvable:$true] %s272_s23 }
  0x12   : > { %p2102_p13 = scmp.ne.s32.totalorder %s3018_s5, %s2101_s27  ;;  %p2108_p3 = scmp.lt.u32.totalorder %s2101_s27, %s3018_s5 }
  0x13   : > { %p2310_p12 = pnand %p3023_p9, %p2052_p11 }
  0x15   : > { %p2103_p0 = pneg %p2310_p12 }
  0x17   : > { %p2104_p1 = pnand %p2103_p0, %p2102_p13 }
  0x19   : > { %p2105_p2 = pneg %p2104_p1 }
  0x1b   : > { %p2110_p4 = pnand %p2108_p3, %p2105_p2 }
  0x1d   : > { %2113 = shalt.err (!%p2110_p4)
}
  0x1e   : > { %s2114_s17 = scalar_lea.vmem %s273_s23, 8192  ;;  %p2122_p9 = scmp.lt.s32.totalorder %s273_s23, %s273_s23 }
  0x1f   : > { %p2115_p7 = scmp.ne.s32.totalorder %s273_s23, %s2114_s17  ;;  %p2123_p6 = scmp.lt.s32.totalorder %s2114_s17, %s2114_s17 }
  0x21   : > { %p2117_p8 = pnand %p2115_p7, %p2103_p0  ;;  %p2124_p5 = por %p2123_p6, %p2122_p9 }
  0x23   : > { %p2118_p11 = pneg %p2117_p8 }
  0x25   : > { %p2125_p10 = pnand %p2124_p5, %p2118_p11 }
  0x27   : > { %2128 = shalt.err (!%p2125_p10)
}
  0x28   : > { %s2198_s22 = smov 256   ;;  %s2199_s25 = smov 16  }
  0x29   : > { %2055 = dma.hbm_to_vmem [thread:$0]  (!%p2310_p12), %s3018_s5, 8192, %s273_s23, [#allocation3], %s2198_s22, %s2198_s22, %s2199_s25  }
  0x2a   : > { %p3030_p13 = scmp.ne.s32.totalorder %s3028_s21, 0 }
  0x2b   : > { %p3031_p1 = scmp.eq.s32.totalorder (!%p3030_p13), %s2274_s13, 0 }
  0x2c   : > { %306 = sbr.rel (%p3030_p13) target bundleno = 1077 (0x435), region = 56 }
  0x33   : > { %2174 = dma.done.wait (%p3031_p1), [#allocation3], 8192   ;;  %p3032_p0 = pmov %p3031_p1 }
  0x34   : > { %s1808_s27 = sshll.u32 %s2274_s13, 5  ;;  %v2200_v0 = vmov 0.0   ;;  %vm492_vm0 = vcmask 1046528   ;;  %v382_v1 = vld [vmem:[%s3014_s1 + $0x8] sm:$0x7f]  ;;  %vm395_vm1 = vcmask 56320  }
  0x35   : > { %2176 = vsyncadd (%p3032_p0), [#allocation3], 4294959104  ;;  %563 = vmatprep.mubr.f32.mxu0 %v2200_v0  ;;  %p343_p5 = scmp.lt.s32.totalorder %s1808_s27, 63  ;;  %659 = vmatprep.mubr.f32.mxu1 %v2200_v0  ;;  %v381_v2 = vld [vmem:[%s3014_s1] sm:$0x7f]  ;;  %v821_v10 = vld [vmem:[%s3016_s3 + $0x8] sm:$0xff] }
  0x36   : > { %1810 = vmatprep.subr.msk.mxu0 %vm492_vm0, %v382_v1  ;;  %2044 = vmatprep.subr.msk.mxu1 %vm492_vm0, %v382_v1  ;;  %v823_v11 = vld [vmem:[%s3016_s3 + $0x18] sm:$0xff]  ;;  %v820_v13 = vld [vmem:[%s3016_s3] sm:$0xff]  ;;  %v822_v14 = vld [vmem:[%s3016_s3 + $0x10] sm:$0xff]  ;;  %s1851_s21 = sshll.u32 %s2274_s13, 6  ;;  %p3033_p9 = scmp.ne.s32.totalorder %s3026_s19, 0 }
  0x37   : > { %s3040_s27 = smov (!%p343_p5, %s1808_s27), 63  ;;  %1811 = vmatpush1.msk.msra.mxu0 %vm492_vm0, %v381_v2  ;;  %2045 = vmatpush1.msk.msra.mxu1 %vm492_vm0, %v381_v2  ;;  %v1852_v12 = vpack.c.bf16 %v823_v11, %v821_v10  ;;  %v825_v15 = vld [vmem:[%s3016_s3 + $0x28] sm:$0xff]  ;;  %v1854_v16 = vpack.c.bf16 %v822_v14, %v820_v13  ;;  %v827_v17 = vld [vmem:[%s3016_s3 + $0x38] sm:$0xff]  ;;  %v824_v19 = vld [vmem:[%s3016_s3 + $0x20] sm:$0xff]  ;;  %s2202_s13 = smov [#allocation5]  }
  0x38   : > { %s1809_s23 = sshll.u32 %s3040_s27, 3  ;;  %v1856_v18 = vpack.c.bf16 %v827_v17, %v825_v15  ;;  %v826_v20 = vld [vmem:[%s3016_s3 + $0x30] sm:$0xff]  ;;  %v829_v21 = vld [vmem:[%s3016_s3 + $0x48] sm:$0xff]  ;;  %v831_v22 = vld [vmem:[%s3016_s3 + $0x58] sm:$0xff]  ;;  %s2133_s28 = sshll.u32 %s2202_s13, 4  ;;  %s2134_s28 = int_to_ptr.vmem [resolvable:$false] %s2133_s28 }
  0x39   : > { %s2342_s29 = scalar_lea.vmem %s3013_s0, %s1809_s23  ;;  %1853 = vmatprep.subr.bf16.mxu1 %v1852_v12  ;;  %v1858_v25 = vpack.c.bf16 %v826_v20, %v824_v19  ;;  %v1860_v26 = vpack.c.bf16 %v831_v22, %v829_v21  ;;  %v828_v27 = vld [vmem:[%s3016_s3 + $0x40] sm:$0xff]  ;;  %v830_v28 = vld [vmem:[%s3016_s3 + $0x50] sm:$0xff]  ;;  %v833_v29 = vld [vmem:[%s3016_s3 + $0x68] sm:$0xff]  ;;  %s339_s23 = sand.u32 1, %s2187_s10  }
  0x3a   : > { %v349_v3 = vld [vmem:[%s2342_s29] sm:$0xff]  ;;  %v350_v4 = vld [vmem:[%s2342_s29 + $0x8] sm:$0xff]  ;;  %v351_v6 = vld [vmem:[%s2342_s29 + $0x10] sm:$0xff]  ;;  %v1862_v33 = vpack.c.bf16 %v830_v28, %v828_v27  ;;  %s1807_s24 = sshll.u32 %s339_s23, 2  ;;  %s1716_s25 = scalar_lea.sflag [#allocation4], %s339_s23 }
  0x3b   : > { %1812 = vmatmul.mubr.msk.f32.vlgmr.msra.gmra.mrb[0].mxu0 %vm395_vm1, %v349_v3  ;;  %v365_v5 = vld [vmem:[%s2342_s29 + $0x80] sm:$0xff]  ;;  %v366_v7 = vld [vmem:[%s2342_s29 + $0x88] sm:$0xff]  ;;  %v352_v8 = vld [vmem:[%s2342_s29 + $0x18] sm:$0xff]  ;;  %s341_s14 = scalar_lea.vmem [#allocation5], %s1807_s24  ;;  %s2135_s27 = scalar_lea.vmem %s2134_s28, 128 }
  0x3c   : > { %569 = vmatprep.mubr.f32.mxu0 %v2200_v0  ;;  %1828 = vmatmul.mubr.msk.f32.vlgmr.msra.gmra.mrb[0].mxu1 %vm395_vm1, %v365_v5  ;;  %v367_v9 = vld [vmem:[%s2342_s29 + $0x90] sm:$0xff]  ;;  %v353_v23 = vld [vmem:[%s2342_s29 + $0x20] sm:$0xff]  ;;  %v368_v24 = vld [vmem:[%s2342_s29 + $0x98] sm:$0xff]  ;;  %s1730_s16 = sshll.u32 %s341_s14, 4  ;;  %s2973_s16 = int_to_ptr.vmem [resolvable:$true] %s1730_s16 }
  0x3d   : > { %665 = vmatprep.mubr.f32.mxu1 %v2200_v0  ;;  %1855 = vmatpush1.bf16.msra.mxu1 %v1854_v16  ;;  %v835_v30 = vld [vmem:[%s3016_s3 + $0x78] sm:$0xff]  ;;  %v354_v31 = vld [vmem:[%s2342_s29 + $0x28] sm:$0xff]  ;;  %v369_v32 = vld [vmem:[%s2342_s29 + $0xa0] sm:$0xff]  ;;  %s2129_s26 = scalar_lea.vmem %s2973_s16, 64  ;;  %p2136_p2 = scmp.lt.s32.totalorder %s2973_s16, %s2134_s28 }
  0x3e   : > { %1857 = vmatprep.subr.bf16.mxu1 %v1856_v18  ;;  %v1864_v34 = vpack.c.bf16 %v835_v30, %v833_v29  ;;  %v832_v35 = vld [vmem:[%s3016_s3 + $0x60] sm:$0xff]  ;;  %v834_v36 = vld [vmem:[%s3016_s3 + $0x70] sm:$0xff]  ;;  %v837_v37 = vld [vmem:[%s3016_s3 + $0x88] sm:$0xff]  ;;  %p2130_p6 = scmp.ne.s32.totalorder %s2973_s16, %s2129_s26  ;;  %p2137_p3 = scmp.lt.s32.totalorder %s2135_s27, %s2129_s26 }
  0x3f   : > { %1813 = vmatmul.mubr.msk.f32.gmra.mrb[2].mxu0 %vm395_vm1, %v350_v4  ;;  %v839_v38 = vld [vmem:[%s3016_s3 + $0x98] sm:$0xff]  ;;  %v355_v39 = vld [vmem:[%s2342_s29 + $0x30] sm:$0xff]  ;;  %v370_v40 = vld [vmem:[%s2342_s29 + $0xa8] sm:$0xff]  ;;  %v1866_v41 = vpack.c.bf16 %v834_v36, %v832_v35 }
  0x40   : > { %575 = vmatprep.mubr.f32.mxu0 %v2200_v0  ;;  %1829 = vmatmul.mubr.msk.f32.gmra.mrb[2].mxu1 %vm395_vm1, %v366_v7  ;;  %v1868_v42 = vpack.c.bf16 %v839_v38, %v837_v37  ;;  %v836_v43 = vld [vmem:[%s3016_s3 + $0x80] sm:$0xff]  ;;  %v838_v44 = vld [vmem:[%s3016_s3 + $0x90] sm:$0xff]  ;;  %v841_v45 = vld [vmem:[%s3016_s3 + $0xa8] sm:$0xff]  ;;  %p2131_p10 = pnand %p2130_p6, %p3033_p9  ;;  %p2138_p4 = por %p2137_p3, %p2136_p2 }
  0x41   : > { %671 = vmatprep.mubr.f32.mxu1 %v2200_v0  ;;  %1859 = vmatpush1.bf16.msra.mxu1 %v1858_v25  ;;  %v843_v46 = vld [vmem:[%s3016_s3 + $0xb8] sm:$0xff]  ;;  %v371_v48 = vld [vmem:[%s2342_s29 + $0xb0] sm:$0xff]  ;;  %v1870_v49 = vpack.c.bf16 %v838_v44, %v836_v43  ;;  %v840_v51 = vld [vmem:[%s3016_s3 + $0xa0] sm:$0xff] }
  0x42   : > { %1861 = vmatprep.subr.bf16.mxu1 %v1860_v26  ;;  %v356_v47 = vld [vmem:[%s2342_s29 + $0x38] sm:$0xff]  ;;  %v1872_v50 = vpack.c.bf16 %v843_v46, %v841_v45  ;;  %v842_v52 = vld [vmem:[%s3016_s3 + $0xb0] sm:$0xff]  ;;  %v845_v53 = vld [vmem:[%s3016_s3 + $0xc8] sm:$0xff]  ;;  %p2132_p12 = pneg %p2131_p10 }
  0x43   : > { %1814 = vmatmul.mubr.msk.f32.gmra.mrb[4].mxu0 %vm395_vm1, %v351_v6  ;;  %v847_v54 = vld [vmem:[%s3016_s3 + $0xd8] sm:$0xff]  ;;  %v357_v55 = vld [vmem:[%s2342_s29 + $0x40] sm:$0xff]  ;;  %v1874_v57 = vpack.c.bf16 %v842_v52, %v840_v51  ;;  %v846_v60 = vld [vmem:[%s3016_s3 + $0xd0] sm:$0xff] }
  0x44   : > { %581 = vmatprep.mubr.f32.mxu0 %v2200_v0  ;;  %1830 = vmatmul.mubr.msk.f32.gmra.mrb[4].mxu1 %vm395_vm1, %v367_v9  ;;  %v372_v56 = vld [vmem:[%s2342_s29 + $0xb8] sm:$0xff]  ;;  %v1876_v58 = vpack.c.bf16 %v847_v54, %v845_v53  ;;  %v844_v59 = vld [vmem:[%s3016_s3 + $0xc0] sm:$0xff]  ;;  %v849_v61 = vld [vmem:[%s3016_s3 + $0xe8] sm:$0xff]  ;;  %p2139_p7 = pnand %p2138_p4, %p2132_p12 }
  0x45   : > { %677 = vmatprep.mubr.f32.mxu1 %v2200_v0  ;;  %1863 = vmatpush1.bf16.msra.mxu1 %v1862_v33  ;;  %v851_v62 = vld [vmem:[%s3016_s3 + $0xf8] sm:$0xff]  ;;  %v358_v63 = vld [vmem:[%s2342_s29 + $0x48] sm:$0xff]  ;;  %v373_v1 = vld [vmem:[%s2342_s29 + $0xc0] sm:$0xff]  ;;  %v1878_v2 = vpack.c.bf16 %v846_v60, %v844_v59 }
  0x46   : > { %1865 = vmatprep.subr.bf16.mxu1 %v1864_v34  ;;  %v1880_v3 = vpack.c.bf16 %v851_v62, %v849_v61  ;;  %v848_v4 = vld [vmem:[%s3016_s3 + $0xe0] sm:$0xff]  ;;  %v850_v5 = vld [vmem:[%s3016_s3 + $0xf0] sm:$0xff]  ;;  %v853_v6 = vld [vmem:[%s3016_s3 + $0x108] sm:$0xff] }
  0x47   : > { %1815 = vmatmul.mubr.msk.f32.gmra.mrb[6].mxu0 %vm395_vm1, %v352_v8  ;;  %v855_v7 = vld [vmem:[%s3016_s3 + $0x118] sm:$0xff]  ;;  %v359_v8 = vld [vmem:[%s2342_s29 + $0x50] sm:$0xff]  ;;  %v374_v9 = vld [vmem:[%s2342_s29 + $0xc8] sm:$0xff]  ;;  %v1882_v10 = vpack.c.bf16 %v850_v5, %v848_v4  ;;  %v385_v4 = vlaneseq }
  0x48   : > { %587 = vmatprep.mubr.f32.mxu0 %v2200_v0  ;;  %1831 = vmatmul.mubr.msk.f32.gmra.mrb[6].mxu1 %vm395_vm1, %v368_v24  ;;  %v1884_v11 = vpack.c.bf16 %v855_v7, %v853_v6  ;;  %v852_v12 = vld [vmem:[%s3016_s3 + $0x100] sm:$0xff]  ;;  %v854_v13 = vld [vmem:[%s3016_s3 + $0x110] sm:$0xff]  ;;  %v857_v14 = vld [vmem:[%s3016_s3 + $0x128] sm:$0xff] }
  0x49   : > { %683 = vmatprep.mubr.f32.mxu1 %v2200_v0  ;;  %1867 = vmatpush1.bf16.msra.mxu1 %v1866_v41  ;;  %v859_v15 = vld [vmem:[%s3016_s3 + $0x138] sm:$0xff]  ;;  %v375_v17 = vld [vmem:[%s2342_s29 + $0xd0] sm:$0xff]  ;;  %v1886_v18 = vpack.c.bf16 %v854_v13, %v852_v12  ;;  %v856_v20 = vld [vmem:[%s3016_s3 + $0x120] sm:$0xff]  ;;  %v386_v5 = vshrl.u32 %v385_v4, 7 }
  0x4a   : > { %1869 = vmatprep.subr.bf16.mxu1 %v1868_v42  ;;  %v360_v16 = vld [vmem:[%s2342_s29 + $0x58] sm:$0xff]  ;;  %v1888_v19 = vpack.c.bf16 %v859_v15, %v857_v14  ;;  %v858_v21 = vld [vmem:[%s3016_s3 + $0x130] sm:$0xff]  ;;  %v861_v22 = vld [vmem:[%s3016_s3 + $0x148] sm:$0xff] }
  0x4b   : > { %1816 = vmatmul.mubr.msk.f32.gmra.mrb[8].mxu0 %vm395_vm1, %v353_v23  ;;  %v863_v23 = vld [vmem:[%s3016_s3 + $0x158] sm:$0xff]  ;;  %v361_v24 = vld [vmem:[%s2342_s29 + $0x60] sm:$0xff]  ;;  %v1890_v26 = vpack.c.bf16 %v858_v21, %v856_v20  ;;  %v862_v29 = vld [vmem:[%s3016_s3 + $0x150] sm:$0xff]  ;;  %v2636_v6 = vsub.s32 0, %v386_v5 }
  0x4c   : > { %593 = vmatprep.mubr.f32.mxu0 %v2200_v0  ;;  %1832 = vmatmul.mubr.msk.f32.gmra.mrb[8].mxu1 %vm395_vm1, %v369_v32  ;;  %v376_v25 = vld [vmem:[%s2342_s29 + $0xd8] sm:$0xff]  ;;  %v1892_v27 = vpack.c.bf16 %v863_v23, %v861_v22  ;;  %v860_v28 = vld [vmem:[%s3016_s3 + $0x140] sm:$0xff]  ;;  %v865_v30 = vld [vmem:[%s3016_s3 + $0x168] sm:$0xff] }
  0x4d   : > { %689 = vmatprep.mubr.f32.mxu1 %v2200_v0  ;;  %1871 = vmatpush1.bf16.msra.mxu1 %v1870_v49  ;;  %v362_v32 = vld [vmem:[%s2342_s29 + $0x68] sm:$0xff]  ;;  %v377_v33 = vld [vmem:[%s2342_s29 + $0xe0] sm:$0xff]  ;;  %v1894_v34 = vpack.c.bf16 %v862_v29, %v860_v28  ;;  %v866_v37 = vld [vmem:[%s3016_s3 + $0x170] sm:$0xff] }
  0x4e   : > { %1873 = vmatprep.subr.bf16.mxu1 %v1872_v50  ;;  %v864_v36 = vld [vmem:[%s3016_s3 + $0x160] sm:$0xff]  ;;  %v869_v38 = vld [vmem:[%s3016_s3 + $0x188] sm:$0xff]  ;;  %v870_v45 = vld [vmem:[%s3016_s3 + $0x190] sm:$0xff] }
  0x4f   : > { %1817 = vmatmul.mubr.msk.f32.gmra.mrb[10].mxu0 %vm395_vm1, %v354_v31  ;;  %v867_v31 = vld [vmem:[%s3016_s3 + $0x178] sm:$0xff]  ;;  %v378_v41 = vld [vmem:[%s2342_s29 + $0xe8] sm:$0xff]  ;;  %v1898_v42 = vpack.c.bf16 %v866_v37, %v864_v36  ;;  %v868_v44 = vld [vmem:[%s3016_s3 + $0x180] sm:$0xff] }
  0x50   : > { %599 = vmatprep.mubr.f32.mxu0 %v2200_v0  ;;  %1833 = vmatmul.mubr.msk.f32.gmra.mrb[10].mxu1 %vm395_vm1, %v370_v40  ;;  %v1896_v35 = vpack.c.bf16 %v867_v31, %v865_v30  ;;  %v363_v40 = vld [vmem:[%s2342_s29 + $0x70] sm:$0xff]  ;;  %v873_v46 = vld [vmem:[%s3016_s3 + $0x1a8] sm:$0xff]  ;;  %v1902_v50 = vpack.c.bf16 %v870_v45, %v868_v44  ;;  %v872_v52 = vld [vmem:[%s3016_s3 + $0x1a0] sm:$0xff] }
  0x51   : > { %695 = vmatprep.mubr.f32.mxu1 %v2200_v0  ;;  %1875 = vmatpush1.bf16.msra.mxu1 %v1874_v57  ;;  %v379_v49 = vld [vmem:[%s2342_s29 + $0xf0] sm:$0xff]  ;;  %v877_v54 = vld [vmem:[%s3016_s3 + $0x1c8] sm:$0xff]  ;;  %v876_v59 = vld [vmem:[%s3016_s3 + $0x1c0] sm:$0xff] }
  0x52   : > { %1877 = vmatprep.subr.bf16.mxu1 %v1876_v58  ;;  %v874_v53 = vld [vmem:[%s3016_s3 + $0x1b0] sm:$0xff]  ;;  %v883_v62 = vld [vmem:[%s3016_s3 + $0x1f8] sm:$0xff]  ;;  %v383_v7 = vld [vmem:[%s3015_s2] sm:$0x3] }
  0x53   : > { %1818 = vmatmul.mubr.msk.f32.gmra.mrb[12].mxu0 %vm395_vm1, %v355_v39  ;;  %v871_v39 = vld [vmem:[%s3016_s3 + $0x198] sm:$0xff]  ;;  %v1906_v57 = vpack.c.bf16 %v874_v53, %v872_v52  ;;  %v878_v60 = vld [vmem:[%s3016_s3 + $0x1d0] sm:$0xff] }
  0x54   : > { %605 = vmatprep.mubr.f32.mxu0 %v2200_v0  ;;  %1834 = vmatmul.mubr.msk.f32.gmra.mrb[12].mxu1 %vm395_vm1, %v371_v48  ;;  %v1900_v43 = vpack.c.bf16 %v871_v39, %v869_v38  ;;  %v364_v48 = vld [vmem:[%s2342_s29 + $0x78] sm:$0xff]  ;;  %v1910_v61 = vpack.c.bf16 %v878_v60, %v876_v59  ;;  %v1219_v23 = vld [vmem:[#allocation2 + $0x10] sm:$0xff] }
  0x55   : > { %701 = vmatprep.mubr.f32.mxu1 %v2200_v0  ;;  %1879 = vmatpush1.bf16.msra.mxu1 %v1878_v2  ;;  %v882_v2 = vld [vmem:[%s3016_s3 + $0x1f0] sm:$0xff]  ;;  %v1228_v36 = vld [vmem:[#allocation2 + $0x58] sm:$0xff] }
  0x56   : > { %1881 = vmatprep.subr.bf16.mxu1 %v1880_v3  ;;  %v1231_v59 = vld [vmem:[#allocation2 + $0x70] sm:$0xff] }
  0x57   : > { %1819 = vmatmul.mubr.msk.f32.gmra.mrb[14].mxu0 %vm395_vm1, %v356_v47  ;;  %v875_v47 = vld [vmem:[%s3016_s3 + $0x1b8] sm:$0xff] }
  0x58   : > { %611 = vmatprep.mubr.f32.mxu0 %v2200_v0  ;;  %1835 = vmatmul.mubr.msk.f32.gmra.mrb[14].mxu1 %vm395_vm1, %v372_v56  ;;  %v1904_v51 = vpack.c.bf16 %v875_v47, %v873_v46  ;;  %v380_v56 = vld [vmem:[%s2342_s29 + $0xf8] sm:$0xff]  ;;  %s2971_s29 = scalar_lea.hbm %s3022_s9, %s1851_s21 }
  0x59   : > { %707 = vmatprep.mubr.f32.mxu1 %v2200_v0  ;;  %1883 = vmatpush1.bf16.msra.mxu1 %v1882_v10 }
  0x5a   : > { %1885 = vmatprep.subr.bf16.mxu1 %v1884_v11 }
  0x5b   : > { %1820 = vmatmul.mubr.msk.f32.gmra.mrb[16].mxu0 %vm395_vm1, %v357_v55  ;;  %v879_v55 = vld [vmem:[%s3016_s3 + $0x1d8] sm:$0xff] }
  0x5c   : > { %617 = vmatprep.mubr.f32.mxu0 %v2200_v0  ;;  %1836 = vmatmul.mubr.msk.f32.gmra.mrb[16].mxu1 %vm395_vm1, %v373_v1  ;;  %v1908_v58 = vpack.c.bf16 %v879_v55, %v877_v54  ;;  %v880_v1 = vld [vmem:[%s3016_s3 + $0x1e0] sm:$0xff] }
  0x5d   : > { %713 = vmatprep.mubr.f32.mxu1 %v2200_v0  ;;  %1887 = vmatpush1.bf16.msra.mxu1 %v1886_v18  ;;  %v1914_v3 = vpack.c.bf16 %v882_v2, %v880_v1  ;;  %v1217_v18 = vld [vmem:[#allocation2] sm:$0xff]  ;;  %v1234_v1 = vld [vmem:[#allocation2 + $0x88] sm:$0xff]  ;;  %v1236_v2 = vld [vmem:[#allocation2 + $0x98] sm:$0xff] }
  0x5e   : > { %1889 = vmatprep.subr.bf16.mxu1 %v1888_v19  ;;  %v1918_v30 = vpack.c.bf16 %v1219_v23, %v1217_v18 }
  0x5f   : > { %1821 = vmatmul.mubr.msk.f32.gmra.mrb[18].mxu0 %vm395_vm1, %v358_v63 }
  0x60   : > { %623 = vmatprep.mubr.f32.mxu0 %v2200_v0  ;;  %1837 = vmatmul.mubr.msk.f32.gmra.mrb[18].mxu1 %vm395_vm1, %v374_v9  ;;  %v2644_v9 = vrot.slane %v383_v7, %v2636_v6 }
  0x61   : > { %719 = vmatprep.mubr.f32.mxu1 %v2200_v0  ;;  %1891 = vmatpush1.bf16.msra.mxu1 %v1890_v26 }
  0x62   : > { %1893 = vmatprep.subr.bf16.mxu1 %v1892_v27 }
  0x63   : > { %1822 = vmatmul.mubr.msk.f32.gmra.mrb[20].mxu0 %vm395_vm1, %v359_v8  ;;  %v2641_v8 = vsub.s32 1, %v386_v5 }
  0x64   : > { %629 = vmatprep.mubr.f32.mxu0 %v2200_v0  ;;  %1838 = vmatmul.mubr.msk.f32.gmra.mrb[20].mxu1 %vm395_vm1, %v375_v17  ;;  %v1220_v17 = vld [vmem:[#allocation2 + $0x18] sm:$0xff] }
  0x65   : > { %725 = vmatprep.mubr.f32.mxu1 %v2200_v0  ;;  %1895 = vmatpush1.bf16.msra.mxu1 %v1894_v34  ;;  %v2647_v10 = vrot.slane %v383_v7, %v2641_v8  ;;  %v1226_v34 = vld [vmem:[#allocation2 + $0x48] sm:$0xff] }
  0x66   : > { %1897 = vmatprep.subr.bf16.mxu1 %v1896_v35 }
  0x67   : > { %1823 = vmatmul.mubr.msk.f32.gmra.mrb[22].mxu0 %vm395_vm1, %v360_v16  ;;  %v1218_v16 = vld [vmem:[#allocation2 + $0x8] sm:$0xff] }
  0x68   : > { %635 = vmatprep.mubr.f32.mxu0 %v2200_v0  ;;  %1839 = vmatmul.mubr.msk.f32.gmra.mrb[22].mxu1 %vm395_vm1, %v376_v25  ;;  %v1916_v22 = vpack.c.bf16 %v1220_v17, %v1218_v16  ;;  %v1224_v25 = vld [vmem:[#allocation2 + $0x38] sm:$0xff] }
  0x69   : > { %731 = vmatprep.mubr.f32.mxu1 %v2200_v0  ;;  %1899 = vmatpush1.bf16.msra.mxu1 %v1898_v42  ;;  %v1225_v42 = vld [vmem:[#allocation2 + $0x40] sm:$0xff] }
  0x6a   : > { %1901 = vmatprep.subr.bf16.mxu1 %v1900_v43  ;;  %1917 = vmatprep.subr.bf16.mxu0 %v1916_v22  ;;  %v1227_v43 = vld [vmem:[#allocation2 + $0x50] sm:$0xff]  ;;  %v1240_v22 = vld [vmem:[#allocation2 + $0xb8] sm:$0xff] }
  0x6b   : > { %1824 = vmatmul.mubr.msk.f32.gmra.mrb[24].mxu0 %vm395_vm1, %v361_v24  ;;  %v1222_v24 = vld [vmem:[#allocation2 + $0x28] sm:$0xff]  ;;  %v1926_v53 = vpack.c.bf16 %v1227_v43, %v1225_v42 }
  0x6c   : > { %641 = vmatprep.mubr.f32.mxu0 %v2200_v0  ;;  %1840 = vmatmul.mubr.msk.f32.gmra.mrb[24].mxu1 %vm395_vm1, %v377_v33  ;;  %v1920_v31 = vpack.c.bf16 %v1224_v25, %v1222_v24  ;;  %v1223_v33 = vld [vmem:[#allocation2 + $0x30] sm:$0xff] }
  0x6d   : > { %737 = vmatprep.mubr.f32.mxu1 %v2200_v0  ;;  %1903 = vmatpush1.bf16.msra.mxu1 %v1902_v50  ;;  %v1232_v50 = vld [vmem:[#allocation2 + $0x78] sm:$0xff] }
  0x6e   : > { %1905 = vmatprep.subr.bf16.mxu1 %v1904_v51  ;;  %1919 = vmatpush1.bf16.msra.mxu0 %v1918_v30 }
  0x6f   : > { %1825 = vmatmul.mubr.msk.f32.gmra.mrb[26].mxu0 %vm395_vm1, %v362_v32  ;;  %v1221_v32 = vld [vmem:[#allocation2 + $0x20] sm:$0xff]  ;;  %1921 = vmatprep.subr.bf16.mxu0 %v1920_v31 }
  0x70   : > { %647 = vmatprep.mubr.f32.mxu0 %v2200_v0  ;;  %1841 = vmatmul.mubr.msk.f32.gmra.mrb[26].mxu1 %vm395_vm1, %v378_v41  ;;  %v1922_v37 = vpack.c.bf16 %v1223_v33, %v1221_v32  ;;  %v1924_v41 = vpack.c.bf16 %v1228_v36, %v1226_v34  ;;  %v1237_v32 = vld [vmem:[#allocation2 + $0xa0] sm:$0xff]  ;;  %v1239_v33 = vld [vmem:[#allocation2 + $0xb0] sm:$0xff] }
  0x71   : > { %743 = vmatprep.mubr.f32.mxu1 %v2200_v0  ;;  %1907 = vmatpush1.bf16.msra.mxu1 %v1906_v57  ;;  %v1938_v43 = vpack.c.bf16 %v1239_v33, %v1237_v32 }
  0x72   : > { %1909 = vmatprep.subr.bf16.mxu1 %v1908_v58  ;;  %1923 = vmatpush1.bf16.msra.mxu0 %v1922_v37  ;;  %v1229_v58 = vld [vmem:[#allocation2 + $0x60] sm:$0xff] }
  0x73   : > { %1826 = vmatmul.mubr.msk.f32.gmra.mrb[28].mxu0 %vm395_vm1, %v363_v40  ;;  %1925 = vmatprep.subr.bf16.mxu0 %v1924_v41  ;;  %v1930_v5 = vpack.c.bf16 %v1231_v59, %v1229_v58  ;;  %v1248_v58 = vld [vmem:[#allocation2 + $0xf8] sm:$0xff] }
  0x74   : > { %653 = vmatprep.mubr.f32.mxu0 %v2200_v0  ;;  %1842 = vmatmul.mubr.msk.f32.gmra.mrb[28].mxu1 %vm395_vm1, %v379_v49  ;;  %v1230_v49 = vld [vmem:[#allocation2 + $0x68] sm:$0xff] }
  0x75   : > { %749 = vmatprep.mubr.f32.mxu1 %v2200_v0  ;;  %1911 = vmatpush1.bf16.msra.mxu1 %v1910_v61  ;;  %v881_v0 = vld [vmem:[%s3016_s3 + $0x1e8] sm:$0xff]  ;;  %v1928_v57 = vpack.c.bf16 %v1232_v50, %v1230_v49  ;;  %v1241_v49 = vld [vmem:[#allocation2 + $0xc0] sm:$0xff]  ;;  %v1243_v50 = vld [vmem:[#allocation2 + $0xd0] sm:$0xff] }
  0x76   : > { %v1912_v63 = vpack.c.bf16 %v883_v62, %v881_v0  ;;  %1927 = vmatpush1.bf16.msra.mxu0 %v1926_v53 }
  0x77   : > { %1827 = vmatmul.mubr.msk.f32.gmra.mrb[30].mxu0 %vm395_vm1, %v364_v48  ;;  %1929 = vmatprep.subr.bf16.mxu0 %v1928_v57  ;;  %v1246_v57 = vld [vmem:[#allocation2 + $0xe8] sm:$0xff] }
  0x78   : > { %1843 = vmatmul.mubr.msk.f32.gmra.mrb[30].mxu1 %vm395_vm1, %v380_v56  ;;  %1913 = vmatprep.subr.bf16.mxu1 %v1912_v63 }
  0x79   : > { %1915 = vmatpush1.bf16.msra.mxu1 %v1914_v3 }
  0x7a   : > { %1931 = vmatpush1.bf16.msra.mxu0 %v1930_v5  ;;  %v1247_v5 = vld [vmem:[#allocation2 + $0xf0] sm:$0xff] }
 0x10e   : > { %v565_v11 = vpop.f32.mrb[0].mxu0 }
 0x10f   : > { %v566_v12 = vadd.f32 %v565_v11, %v2644_v9  ;;  %v567_v13 = vpop.f32.mrb[1].mxu0  ;;  %v661_v21 = vpop.f32.mrb[0].mxu1 }
 0x110   : > { %v568_v14 = vadd.f32 %v567_v13, %v2647_v10  ;;  %v2653_v28 = vadd.f32 %v661_v21, %v2644_v9  ;;  %v2655_v29 = vpop.f32.mrb[1].mxu1  ;;  %v1932_v13 = vpack.c.bf16 %v1236_v2, %v1234_v1  ;;  %v1238_v21 = vld [vmem:[#allocation2 + $0xa8] sm:$0xff]  ;;  %v1944_v2 = vpack.c.bf16 %v1248_v58, %v1246_v57  ;;  %v1260_v57 = vld [vmem:[#allocation2 + $0x158] sm:$0xff] }
 0x111   : > { %v756_v15 = vmax.f32 %v566_v12, 0.0  ;;  %v1936_v31 = vpack.c.bf16 %v1240_v22, %v1238_v21 }
 0x112   : > { %v757_v19 = vmax.f32 %v568_v14, 0.0  ;;  %v571_v20 = vpop.f32.mrb[2].mxu0  ;;  %v1233_v14 = vld [vmem:[#allocation2 + $0x80] sm:$0xff]  ;;  %1933 = vmatprep.subr.bf16.mxu0 %v1932_v13 }
 0x113   : > { %v572_v26 = vadd.f32 %v571_v20, %v2644_v9  ;;  %v573_v27 = vpop.f32.mrb[3].mxu0  ;;  %v667_v40 = vpop.f32.mrb[2].mxu1 }
 0x114   : > { %v574_v35 = vadd.f32 %v573_v27, %v2647_v10  ;;  %960 = vmatprep.mubr.f32.mxu1 %v757_v19  ;;  %v2660_v47 = vadd.f32 %v667_v40, %v2644_v9  ;;  %v669_v48 = vpop.f32.mrb[3].mxu1  ;;  %v1244_v40 = vld [vmem:[#allocation2 + $0xd8] sm:$0xff] }
 0x115   : > { %961 = vmatmul.mubr.f32.vlgmr.msra.gmra.mrb[32].mxu1 %v756_v15  ;;  %v758_v44 = vmax.f32 %v572_v26, 0.0  ;;  %v2664_v52 = vadd.f32 %v669_v48, %v2647_v10  ;;  %v1235_v15 = vld [vmem:[#allocation2 + $0x90] sm:$0xff] }
 0x116   : > { %v759_v38 = vmax.f32 %v574_v35, 0.0  ;;  %v577_v39 = vpop.f32.mrb[4].mxu0  ;;  %v1934_v25 = vpack.c.bf16 %v1235_v15, %v1233_v14  ;;  %v1250_v15 = vld [vmem:[#allocation2 + $0x108] sm:$0xff] }
 0x117   : > { %v578_v45 = vadd.f32 %v577_v39, %v2644_v9  ;;  %v579_v46 = vpop.f32.mrb[5].mxu0  ;;  %v673_v56 = vpop.f32.mrb[4].mxu1  ;;  %v1242_v39 = vld [vmem:[#allocation2 + $0xc8] sm:$0xff] }
 0x118   : > { %v580_v51 = vadd.f32 %v579_v46, %v2647_v10  ;;  %966 = vmatprep.mubr.f32.mxu1 %v759_v38  ;;  %v2668_v62 = vadd.f32 %v673_v56, %v2644_v9  ;;  %v675_v63 = vpop.f32.mrb[5].mxu1  ;;  %1935 = vmatpush1.bf16.msra.mxu0 %v1934_v25  ;;  %v1940_v48 = vpack.c.bf16 %v1244_v40, %v1242_v39 }
 0x119   : > { %967 = vmatmul.mubr.f32.gmra.mrb[34].mxu1 %v758_v44  ;;  %v760_v60 = vmax.f32 %v578_v45, 0.0  ;;  %v2672_v4 = vadd.f32 %v675_v63, %v2647_v10  ;;  %1937 = vmatprep.subr.bf16.mxu0 %v1936_v31 }
 0x11a   : > { %v761_v54 = vmax.f32 %v580_v51, 0.0  ;;  %v583_v55 = vpop.f32.mrb[6].mxu0 }
 0x11b   : > { %v584_v61 = vadd.f32 %v583_v55, %v2644_v9  ;;  %v585_v0 = vpop.f32.mrb[7].mxu0  ;;  %v679_v12 = vpop.f32.mrb[6].mxu1 }
 0x11c   : > { %v586_v3 = vadd.f32 %v585_v0, %v2647_v10  ;;  %972 = vmatprep.mubr.f32.mxu1 %v761_v54  ;;  %v2676_v19 = vadd.f32 %v679_v12, %v2644_v9  ;;  %v681_v20 = vpop.f32.mrb[7].mxu1  ;;  %1939 = vmatpush1.bf16.msra.mxu0 %v1938_v43 }
 0x11d   : > { %973 = vmatmul.mubr.f32.gmra.mrb[36].mxu1 %v760_v60  ;;  %v762_v16 = vmax.f32 %v584_v61, 0.0  ;;  %v2680_v24 = vadd.f32 %v681_v20, %v2647_v10  ;;  %v1942_v61 = vpack.c.bf16 %v1243_v50, %v1241_v49  ;;  %1941 = vmatprep.subr.bf16.mxu0 %v1940_v48  ;;  %v1255_v48 = vld [vmem:[#allocation2 + $0x130] sm:$0xff] }
 0x11e   : > { %v763_v7 = vmax.f32 %v586_v3, 0.0  ;;  %v589_v11 = vpop.f32.mrb[8].mxu0  ;;  %v1245_v3 = vld [vmem:[#allocation2 + $0xe0] sm:$0xff] }
 0x11f   : > { %v590_v17 = vadd.f32 %v589_v11, %v2644_v9  ;;  %v591_v18 = vpop.f32.mrb[9].mxu0  ;;  %v685_v30 = vpop.f32.mrb[8].mxu1  ;;  %v1946_v20 = vpack.c.bf16 %v1247_v5, %v1245_v3  ;;  %v1257_v3 = vld [vmem:[#allocation2 + $0x140] sm:$0xff]  ;;  %v1259_v5 = vld [vmem:[#allocation2 + $0x150] sm:$0xff] }
 0x120   : > { %v592_v23 = vadd.f32 %v591_v18, %v2647_v10  ;;  %978 = vmatprep.mubr.f32.mxu1 %v763_v7  ;;  %v2684_v37 = vadd.f32 %v685_v30, %v2644_v9  ;;  %v687_v38 = vpop.f32.mrb[9].mxu1  ;;  %1943 = vmatpush1.bf16.msra.mxu0 %v1942_v61 }
 0x121   : > { %979 = vmatmul.mubr.f32.gmra.mrb[38].mxu1 %v762_v16  ;;  %v764_v34 = vmax.f32 %v590_v17, 0.0  ;;  %v2688_v42 = vadd.f32 %v687_v38, %v2647_v10  ;;  %v1252_v16 = vld [vmem:[#allocation2 + $0x118] sm:$0xff]  ;;  %1945 = vmatprep.subr.bf16.mxu0 %v1944_v2 }
 0x122   : > { %v765_v26 = vmax.f32 %v592_v23, 0.0  ;;  %v595_v27 = vpop.f32.mrb[10].mxu0  ;;  %v1948_v25 = vpack.c.bf16 %v1252_v16, %v1250_v15  ;;  %v1262_v16 = vld [vmem:[#allocation2 + $0x168] sm:$0xff] }
 0x123   : > { %v596_v35 = vadd.f32 %v595_v27, %v2644_v9  ;;  %v597_v36 = vpop.f32.mrb[11].mxu0  ;;  %v691_v46 = vpop.f32.mrb[10].mxu1  ;;  %v1251_v27 = vld [vmem:[#allocation2 + $0x110] sm:$0xff] }
 0x124   : > { %v598_v41 = vadd.f32 %v597_v36, %v2647_v10  ;;  %984 = vmatprep.mubr.f32.mxu1 %v765_v26  ;;  %v2692_v55 = vadd.f32 %v691_v46, %v2644_v9  ;;  %v693_v56 = vpop.f32.mrb[11].mxu1  ;;  %v1249_v26 = vld [vmem:[#allocation2 + $0x100] sm:$0xff]  ;;  %v1256_v36 = vld [vmem:[#allocation2 + $0x138] sm:$0xff]  ;;  %1947 = vmatpush1.bf16.msra.mxu0 %v1946_v20 }
 0x125   : > { %985 = vmatmul.mubr.f32.gmra.mrb[40].mxu1 %v764_v34  ;;  %v766_v51 = vmax.f32 %v596_v35, 0.0  ;;  %v2696_v60 = vadd.f32 %v693_v56, %v2647_v10  ;;  %v1254_v35 = vld [vmem:[#allocation2 + $0x128] sm:$0xff]  ;;  %v1950_v40 = vpack.c.bf16 %v1251_v27, %v1249_v26  ;;  %1949 = vmatprep.subr.bf16.mxu0 %v1948_v25  ;;  %v1253_v46 = vld [vmem:[#allocation2 + $0x120] sm:$0xff] }
 0x126   : > { %v767_v44 = vmax.f32 %v598_v41, 0.0  ;;  %v601_v45 = vpop.f32.mrb[12].mxu0  ;;  %v1258_v56 = vld [vmem:[#allocation2 + $0x148] sm:$0xff]  ;;  %v1954_v61 = vpack.c.bf16 %v1255_v48, %v1253_v46 }
 0x127   : > { %v602_v53 = vadd.f32 %v601_v45, %v2644_v9  ;;  %v603_v54 = vpop.f32.mrb[13].mxu0  ;;  %v697_v1 = vpop.f32.mrb[12].mxu1  ;;  %v1952_v45 = vpack.c.bf16 %v1256_v36, %v1254_v35  ;;  %v1956_v2 = vpack.c.bf16 %v1260_v57, %v1258_v56 }
 0x128   : > { %v604_v59 = vadd.f32 %v603_v54, %v2647_v10  ;;  %990 = vmatprep.mubr.f32.mxu1 %v767_v44  ;;  %v2700_v13 = vadd.f32 %v697_v1, %v2644_v9  ;;  %v699_v14 = vpop.f32.mrb[13].mxu1  ;;  %1951 = vmatpush1.bf16.msra.mxu0 %v1950_v40  ;;  %v1266_v40 = vld [vmem:[#allocation2 + $0x188] sm:$0xff] }
 0x129   : > { %991 = vmatmul.mubr.f32.gmra.mrb[42].mxu1 %v766_v51  ;;  %v768_v7 = vmax.f32 %v602_v53, 0.0  ;;  %v2704_v18 = vadd.f32 %v699_v14, %v2647_v10  ;;  %1953 = vmatprep.subr.bf16.mxu0 %v1952_v45 }
 0x12a   : > { %v769_v0 = vmax.f32 %v604_v59, 0.0  ;;  %v607_v63 = vpop.f32.mrb[14].mxu0 }
 0x12b   : > { %v608_v11 = vadd.f32 %v607_v63, %v2644_v9  ;;  %v609_v12 = vpop.f32.mrb[15].mxu0  ;;  %v703_v23 = vpop.f32.mrb[14].mxu1 }
 0x12c   : > { %v610_v17 = vadd.f32 %v609_v12, %v2647_v10  ;;  %996 = vmatprep.mubr.f32.mxu1 %v769_v0  ;;  %v2708_v33 = vadd.f32 %v703_v23, %v2644_v9  ;;  %v705_v34 = vpop.f32.mrb[15].mxu1  ;;  %1955 = vmatpush1.bf16.msra.mxu0 %v1954_v61 }
 0x12d   : > { %997 = vmatmul.mubr.f32.gmra.mrb[44].mxu1 %v768_v7  ;;  %v770_v30 = vmax.f32 %v608_v11, 0.0  ;;  %v2712_v39 = vadd.f32 %v705_v34, %v2647_v10  ;;  %1957 = vmatprep.subr.bf16.mxu0 %v1956_v2 }
 0x12e   : > { %v771_v21 = vmax.f32 %v610_v17, 0.0  ;;  %v613_v22 = vpop.f32.mrb[16].mxu0  ;;  %v1264_v17 = vld [vmem:[#allocation2 + $0x178] sm:$0xff] }
 0x12f   : > { %v614_v31 = vadd.f32 %v613_v22, %v2644_v9  ;;  %v615_v32 = vpop.f32.mrb[17].mxu0  ;;  %v709_v44 = vpop.f32.mrb[16].mxu1  ;;  %v1958_v22 = vpack.c.bf16 %v1259_v5, %v1257_v3  ;;  %v1960_v27 = vpack.c.bf16 %v1264_v17, %v1262_v16  ;;  %v1269_v16 = vld [vmem:[#allocation2 + $0x1a0] sm:$0xff]  ;;  %v1271_v17 = vld [vmem:[#allocation2 + $0x1b0] sm:$0xff] }
 0x130   : > { %v616_v38 = vadd.f32 %v615_v32, %v2647_v10  ;;  %1002 = vmatprep.mubr.f32.mxu1 %v771_v21  ;;  %v2716_v53 = vadd.f32 %v709_v44, %v2644_v9  ;;  %v711_v54 = vpop.f32.mrb[17].mxu1 }
 0x131   : > { %1003 = vmatmul.mubr.f32.gmra.mrb[46].mxu1 %v770_v30  ;;  %v772_v49 = vmax.f32 %v614_v31, 0.0  ;;  %v2720_v59 = vadd.f32 %v711_v54, %v2647_v10  ;;  %v1261_v30 = vld [vmem:[#allocation2 + $0x160] sm:$0xff]  ;;  %v1263_v31 = vld [vmem:[#allocation2 + $0x170] sm:$0xff]  ;;  %1959 = vmatpush1.bf16.msra.mxu0 %v1958_v22 }
 0x132   : > { %v773_v41 = vmax.f32 %v616_v38, 0.0  ;;  %v619_v43 = vpop.f32.mrb[18].mxu0  ;;  %v1962_v45 = vpack.c.bf16 %v1263_v31, %v1261_v30  ;;  %1961 = vmatprep.subr.bf16.mxu0 %v1960_v27  ;;  %v1267_v54 = vld [vmem:[#allocation2 + $0x190] sm:$0xff]  ;;  %v1274_v27 = vld [vmem:[#allocation2 + $0x1c8] sm:$0xff]  ;;  %v1276_v30 = vld [vmem:[#allocation2 + $0x1d8] sm:$0xff] }
 0x133   : > { %v620_v50 = vadd.f32 %v619_v43, %v2644_v9  ;;  %v621_v51 = vpop.f32.mrb[19].mxu0  ;;  %v715_v1 = vpop.f32.mrb[18].mxu1 }
 0x134   : > { %v622_v58 = vadd.f32 %v621_v51, %v2647_v10  ;;  %1008 = vmatprep.mubr.f32.mxu1 %v773_v41  ;;  %v2724_v14 = vadd.f32 %v715_v1, %v2644_v9  ;;  %v717_v15 = vpop.f32.mrb[19].mxu1  ;;  %v1268_v41 = vld [vmem:[#allocation2 + $0x198] sm:$0xff]  ;;  %v1265_v51 = vld [vmem:[#allocation2 + $0x180] sm:$0xff] }
 0x135   : > { %1009 = vmatmul.mubr.f32.gmra.mrb[48].mxu1 %v772_v49  ;;  %v774_v7 = vmax.f32 %v620_v50, 0.0  ;;  %v2728_v21 = vadd.f32 %v717_v15, %v2647_v10  ;;  %v1964_v50 = vpack.c.bf16 %v1268_v41, %v1266_v40  ;;  %v1272_v1 = vld [vmem:[#allocation2 + $0x1b8] sm:$0xff]  ;;  %1963 = vmatpush1.bf16.msra.mxu0 %v1962_v45  ;;  %v1966_v5 = vpack.c.bf16 %v1267_v54, %v1265_v51 }
 0x136   : > { %v775_v0 = vmax.f32 %v622_v58, 0.0  ;;  %v625_v63 = vpop.f32.mrb[20].mxu0  ;;  %v1972_v41 = vpack.c.bf16 %v1276_v30, %v1274_v27  ;;  %v793_v27 = vmax.f32 %v2672_v4, 0.0  ;;  %v790_v30 = vmax.f32 %v2660_v47, 0.0  ;;  %v1273_v47 = vld [vmem:[#allocation2 + $0x1c0] sm:$0xff] }
 0x137   : > { %v626_v11 = vadd.f32 %v625_v63, %v2644_v9  ;;  %v627_v12 = vpop.f32.mrb[21].mxu0  ;;  %v721_v26 = vpop.f32.mrb[20].mxu1  ;;  %v1270_v63 = vld [vmem:[#allocation2 + $0x1a8] sm:$0xff]  ;;  %1965 = vmatprep.subr.bf16.mxu0 %v1964_v50  ;;  %v796_v4 = vmax.f32 %v2684_v37, 0.0 }
 0x138   : > { %v628_v20 = vadd.f32 %v627_v12, %v2647_v10  ;;  %1014 = vmatprep.mubr.f32.mxu1 %v775_v0  ;;  %v2732_v36 = vadd.f32 %v721_v26, %v2644_v9  ;;  %v723_v38 = vpop.f32.mrb[21].mxu1  ;;  %v1968_v15 = vpack.c.bf16 %v1272_v1, %v1270_v63 }
 0x139   : > { %1015 = vmatmul.mubr.f32.gmra.mrb[50].mxu1 %v774_v7  ;;  %v776_v32 = vmax.f32 %v626_v11, 0.0  ;;  %v2736_v44 = vadd.f32 %v723_v38, %v2647_v10  ;;  %1967 = vmatpush1.bf16.msra.mxu0 %v1966_v5 }
 0x13a   : > { %v777_v23 = vmax.f32 %v628_v20, 0.0  ;;  %v631_v25 = vpop.f32.mrb[22].mxu0  ;;  %1969 = vmatprep.subr.bf16.mxu0 %v1968_v15 }
 0x13b   : > { %v632_v34 = vadd.f32 %v631_v25, %v2644_v9  ;;  %v633_v35 = vpop.f32.mrb[23].mxu0  ;;  %v727_v49 = vpop.f32.mrb[22].mxu1 }
 0x13c   : > { %v634_v43 = vadd.f32 %v633_v35, %v2647_v10  ;;  %1020 = vmatprep.mubr.f32.mxu1 %v777_v23  ;;  %v2740_v61 = vadd.f32 %v727_v49, %v2644_v9  ;;  %v729_v0 = vpop.f32.mrb[23].mxu1 }
 0x13d   : > { %1021 = vmatmul.mubr.f32.gmra.mrb[52].mxu1 %v776_v32  ;;  %v778_v56 = vmax.f32 %v632_v34, 0.0  ;;  %v2744_v3 = vadd.f32 %v729_v0, %v2647_v10  ;;  %v1970_v34 = vpack.c.bf16 %v1271_v17, %v1269_v16 }
 0x13e   : > { %v779_v46 = vmax.f32 %v634_v43, 0.0  ;;  %v637_v48 = vpop.f32.mrb[24].mxu0 }
 0x13f   : > { %v638_v57 = vadd.f32 %v637_v48, %v2644_v9  ;;  %v639_v58 = vpop.f32.mrb[25].mxu0  ;;  %v733_v12 = vpop.f32.mrb[24].mxu1  ;;  %1971 = vmatpush1.bf16.msra.mxu0 %v1970_v34  ;;  %v1275_v34 = vld [vmem:[#allocation2 + $0x1d0] sm:$0xff] }
 0x140   : > { %v640_v2 = vadd.f32 %v639_v58, %v2647_v10  ;;  %1026 = vmatprep.mubr.f32.mxu1 %v779_v46  ;;  %v2748_v25 = vadd.f32 %v733_v12, %v2644_v9  ;;  %v735_v26 = vpop.f32.mrb[25].mxu1  ;;  %1973 = vmatprep.subr.bf16.mxu0 %v1972_v41  ;;  %v1279_v41 = vld [vmem:[#allocation2 + $0x1f0] sm:$0xff] }
 0x141   : > { %1027 = vmatmul.mubr.f32.gmra.mrb[54].mxu1 %v778_v56  ;;  %v780_v20 = vmax.f32 %v638_v57, 0.0  ;;  %v2752_v32 = vadd.f32 %v735_v26, %v2647_v10  ;;  %v664_v57 = vadd.f32 %v2655_v29, %v2647_v10  ;;  %v788_v26 = vmax.f32 %v2653_v28, 0.0 }
 0x142   : > { %v781_v7 = vmax.f32 %v640_v2, 0.0  ;;  %v643_v11 = vpop.f32.mrb[26].mxu0  ;;  %v799_v28 = vmax.f32 %v2696_v60, 0.0  ;;  %v803_v60 = vmax.f32 %v2712_v39, 0.0  ;;  %v809_v39 = vmax.f32 %v2736_v44, 0.0 }
 0x143   : > { %v644_v22 = vadd.f32 %v643_v11, %v2644_v9  ;;  %v645_v23 = vpop.f32.mrb[27].mxu0  ;;  %v739_v40 = vpop.f32.mrb[26].mxu1  ;;  %v789_v15 = vmax.f32 %v664_v57, 0.0  ;;  %v812_v44 = vmax.f32 %v2748_v25, 0.0  ;;  %v884_v25 = vld [vmem:[%s3017_s4] sm:$0x3] }
 0x144   : > { %v646_v31 = vadd.f32 %v645_v23, %v2647_v10  ;;  %1032 = vmatprep.mubr.f32.mxu1 %v781_v7  ;;  %v2756_v48 = vadd.f32 %v739_v40, %v2644_v9  ;;  %v741_v49 = vpop.f32.mrb[27].mxu1  ;;  %v791_v23 = vmax.f32 %v2664_v52, 0.0  ;;  %v794_v52 = vmax.f32 %v2676_v19, 0.0  ;;  %v1277_v40 = vld [vmem:[#allocation2 + $0x1e0] sm:$0xff] }
 0x145   : > { %1033 = vmatmul.mubr.f32.gmra.mrb[56].mxu1 %v780_v20  ;;  %v782_v43 = vmax.f32 %v644_v22, 0.0  ;;  %v2760_v51 = vadd.f32 %v741_v49, %v2647_v10  ;;  %v1978_v37 = vpack.c.bf16 %v1279_v41, %v1277_v40  ;;  %v811_v49 = vmax.f32 %v2744_v3, 0.0 }
 0x146   : > { %v783_v35 = vmax.f32 %v646_v31, 0.0  ;;  %v649_v38 = vpop.f32.mrb[28].mxu0  ;;  %v792_v31 = vmax.f32 %v2668_v62, 0.0  ;;  %v798_v62 = vmax.f32 %v2692_v55, 0.0  ;;  %v802_v55 = vmax.f32 %v2708_v33, 0.0 }
 0x147   : > { %v650_v45 = vadd.f32 %v649_v38, %v2644_v9  ;;  %v651_v46 = vpop.f32.mrb[29].mxu0  ;;  %v745_v58 = vpop.f32.mrb[28].mxu1  ;;  %v1280_v38 = vld [vmem:[#allocation2 + $0x1f8] sm:$0xff]  ;;  %v813_v33 = vmax.f32 %v2752_v32, 0.0  ;;  %v814_v3 = vmax.f32 %v2756_v48, 0.0  ;;  %v2816_v48 = vrot.slane %v884_v25, %v2641_v8 }
 0x148   : > { %v652_v50 = vadd.f32 %v651_v46, %v2647_v10  ;;  %1038 = vmatprep.mubr.f32.mxu1 %v783_v35  ;;  %v2766_v2 = vadd.f32 %v745_v58, %v2644_v9  ;;  %v747_v5 = vpop.f32.mrb[29].mxu1  ;;  %v1974_v35 = vpack.c.bf16 %v1275_v34, %v1273_v47  ;;  %v804_v46 = vmax.f32 %v2716_v53, 0.0 }
 0x149   : > { %1039 = vmatmul.mubr.f32.gmra.mrb[58].mxu1 %v782_v43  ;;  %v784_v0 = vmax.f32 %v650_v45, 0.0  ;;  %v2770_v11 = vadd.f32 %v747_v5, %v2647_v10  ;;  %v800_v43 = vmax.f32 %v2700_v13, 0.0  ;;  %v807_v45 = vmax.f32 %v2728_v21, 0.0 }
 0x14a   : > { %v785_v54 = vmax.f32 %v652_v50, 0.0  ;;  %v655_v56 = vpop.f32.mrb[30].mxu0  ;;  %1975 = vmatpush1.bf16.msra.mxu0 %v1974_v35  ;;  %v806_v13 = vmax.f32 %v2724_v14, 0.0  ;;  %v810_v21 = vmax.f32 %v2740_v61, 0.0  ;;  %v815_v53 = vmax.f32 %v2760_v51, 0.0 }
 0x14b   : > { %v656_v63 = vadd.f32 %v655_v56, %v2644_v9  ;;  %v657_v1 = vpop.f32.mrb[31].mxu0  ;;  %v751_v29 = vpop.f32.mrb[30].mxu1  ;;  %v817_v14 = vmax.f32 %v2770_v11, 0.0  ;;  %v816_v32 = vmax.f32 %v2766_v2, 0.0  ;;  %v2813_v50 = vrot.slane %v884_v25, %v2636_v6 }
 0x14c   : > { %v658_v7 = vadd.f32 %v657_v1, %v2647_v10  ;;  %1044 = vmatprep.mubr.f32.mxu1 %v785_v54  ;;  %v2773_v17 = vadd.f32 %v751_v29, %v2644_v9  ;;  %v753_v20 = vpop.f32.mrb[31].mxu1  ;;  %v795_v9 = vmax.f32 %v2680_v24, 0.0  ;;  %v801_v24 = vmax.f32 %v2704_v18, 0.0 }
 0x14d   : > { %1045 = vmatmul.mubr.f32.gmra.mrb[60].mxu1 %v784_v0  ;;  %v786_v16 = vmax.f32 %v656_v63, 0.0  ;;  %v2776_v22 = vadd.f32 %v753_v20, %v2647_v10  ;;  %v797_v10 = vmax.f32 %v2688_v42, 0.0  ;;  %v1278_v42 = vld [vmem:[#allocation2 + $0x1e8] sm:$0xff]  ;;  %v805_v18 = vmax.f32 %v2720_v59, 0.0 }
 0x14e   : > { %v787_v12 = vmax.f32 %v658_v7, 0.0  ;;  %v1976_v19 = vpack.c.bf16 %v1280_v38, %v1278_v42  ;;  %v808_v59 = vmax.f32 %v2732_v36, 0.0  ;;  %v818_v61 = vmax.f32 %v2773_v17, 0.0 }
 0x14f   : > { %v819_v36 = vmax.f32 %v2776_v22, 0.0 }
 0x150   : > { %1050 = vmatprep.mubr.f32.mxu1 %v787_v12  ;;  %1977 = vmatprep.subr.bf16.mxu0 %v1976_v19 }
 0x151   : > { %1051 = vmatmul.mubr.f32.gmra.mrb[62].mxu1 %v786_v16  ;;  %1979 = vmatpush1.bf16.msra.mxu0 %v1978_v37 }
 0x152   : > { %1056 = vmatprep.mubr.f32.mxu1 %v789_v15 }
 0x155   : > { %1057 = vmatmul.mubr.f32.gmra.mrb[64].mxu1 %v788_v26 }
 0x156   : > { %1062 = vmatprep.mubr.f32.mxu1 %v791_v23 }
 0x159   : > { %1063 = vmatmul.mubr.f32.gmra.mrb[66].mxu1 %v790_v30 }
 0x15a   : > { %1068 = vmatprep.mubr.f32.mxu1 %v793_v27 }
 0x15d   : > { %1069 = vmatmul.mubr.f32.gmra.mrb[68].mxu1 %v792_v31 }
 0x15e   : > { %1074 = vmatprep.mubr.f32.mxu1 %v795_v9 }
 0x161   : > { %1075 = vmatmul.mubr.f32.gmra.mrb[70].mxu1 %v794_v52 }
 0x162   : > { %1080 = vmatprep.mubr.f32.mxu1 %v797_v10 }
 0x165   : > { %1081 = vmatmul.mubr.f32.gmra.mrb[72].mxu1 %v796_v4 }
 0x166   : > { %1086 = vmatprep.mubr.f32.mxu1 %v799_v28 }
 0x169   : > { %1087 = vmatmul.mubr.f32.gmra.mrb[74].mxu1 %v798_v62 }
 0x16a   : > { %1092 = vmatprep.mubr.f32.mxu1 %v801_v24 }
 0x16d   : > { %1093 = vmatmul.mubr.f32.gmra.mrb[76].mxu1 %v800_v43 }
 0x16e   : > { %1098 = vmatprep.mubr.f32.mxu1 %v803_v60 }
 0x171   : > { %1099 = vmatmul.mubr.f32.gmra.mrb[78].mxu1 %v802_v55 }
 0x172   : > { %1104 = vmatprep.mubr.f32.mxu1 %v805_v18 }
 0x175   : > { %1105 = vmatmul.mubr.f32.gmra.mrb[80].mxu1 %v804_v46 }
 0x176   : > { %1110 = vmatprep.mubr.f32.mxu1 %v807_v45 }
 0x179   : > { %1111 = vmatmul.mubr.f32.gmra.mrb[82].mxu1 %v806_v13 }
 0x17a   : > { %1116 = vmatprep.mubr.f32.mxu1 %v809_v39 }
 0x17d   : > { %1117 = vmatmul.mubr.f32.gmra.mrb[84].mxu1 %v808_v59 }
 0x17e   : > { %1122 = vmatprep.mubr.f32.mxu1 %v811_v49 }
 0x181   : > { %1123 = vmatmul.mubr.f32.gmra.mrb[86].mxu1 %v810_v21 }
 0x182   : > { %1128 = vmatprep.mubr.f32.mxu1 %v813_v33 }
 0x185   : > { %1129 = vmatmul.mubr.f32.gmra.mrb[88].mxu1 %v812_v44 }
 0x186   : > { %1134 = vmatprep.mubr.f32.mxu1 %v815_v53 }
 0x189   : > { %1135 = vmatmul.mubr.f32.gmra.mrb[90].mxu1 %v814_v3 }
 0x18a   : > { %1140 = vmatprep.mubr.f32.mxu1 %v817_v14 }
 0x18d   : > { %1141 = vmatmul.mubr.f32.gmra.mrb[92].mxu1 %v816_v32 }
 0x18e   : > { %1146 = vmatprep.mubr.f32.mxu1 %v819_v36 }
 0x191   : > { %1147 = vmatmul.mubr.f32.gmra.mrb[94].mxu1 %v818_v61 }
 0x1e8   : > { %v962_v51 = vpop.f32.mrb[32].mxu1 }
 0x1e9   : > { %v963_v54 = vadd.f32 %v962_v51, %v2813_v50  ;;  %v964_v56 = vpop.f32.mrb[33].mxu1 }
 0x1ea   : > { %v965_v57 = vadd.f32 %v964_v56, %v2816_v48 }
 0x1eb   : > { %v1153_v63 = vmax.f32 %v963_v54, 0.0 }
 0x1ec   : > { %v1154_v58 = vmax.f32 %v965_v57, 0.0  ;;  %v968_v0 = vpop.f32.mrb[34].mxu1 }
 0x1ed   : > { %v969_v1 = vadd.f32 %v968_v0, %v2813_v50  ;;  %v970_v2 = vpop.f32.mrb[35].mxu1 }
 0x1ee   : > { %v971_v5 = vadd.f32 %v970_v2, %v2816_v48  ;;  %1357 = vmatprep.mubr.f32.mxu0 %v1154_v58 }
 0x1ef   : > { %1358 = vmatmul.mubr.f32.vlgmr.msra.gmra.mrb[32].mxu0 %v1153_v63  ;;  %v1155_v12 = vmax.f32 %v969_v1, 0.0 }
 0x1f0   : > { %v1156_v7 = vmax.f32 %v971_v5, 0.0  ;;  %v974_v11 = vpop.f32.mrb[36].mxu1 }
 0x1f1   : > { %v975_v15 = vadd.f32 %v974_v11, %v2813_v50  ;;  %v976_v29 = vpop.f32.mrb[37].mxu1 }
 0x1f2   : > { %v977_v16 = vadd.f32 %v976_v29, %v2816_v48  ;;  %1363 = vmatprep.mubr.f32.mxu0 %v1156_v7 }
 0x1f3   : > { %1364 = vmatmul.mubr.f32.gmra.mrb[34].mxu0 %v1155_v12  ;;  %v1157_v22 = vmax.f32 %v975_v15, 0.0 }
 0x1f4   : > { %v1158_v17 = vmax.f32 %v977_v16, 0.0  ;;  %v980_v20 = vpop.f32.mrb[38].mxu1 }
 0x1f5   : > { %v981_v23 = vadd.f32 %v980_v20, %v2813_v50  ;;  %v982_v26 = vpop.f32.mrb[39].mxu1 }
 0x1f6   : > { %v983_v27 = vadd.f32 %v982_v26, %v2816_v48  ;;  %1369 = vmatprep.mubr.f32.mxu0 %v1158_v17 }
 0x1f7   : > { %1370 = vmatmul.mubr.f32.gmra.mrb[36].mxu0 %v1157_v22  ;;  %v1159_v31 = vmax.f32 %v981_v23, 0.0 }
 0x1f8   : > { %v1160_v30 = vmax.f32 %v983_v27, 0.0  ;;  %v986_v9 = vpop.f32.mrb[40].mxu1 }
 0x1f9   : > { %v987_v10 = vadd.f32 %v986_v9, %v2813_v50  ;;  %v988_v52 = vpop.f32.mrb[41].mxu1 }
 0x1fa   : > { %v989_v28 = vadd.f32 %v988_v52, %v2816_v48  ;;  %1375 = vmatprep.mubr.f32.mxu0 %v1160_v30 }
 0x1fb   : > { %1376 = vmatmul.mubr.f32.gmra.mrb[38].mxu0 %v1159_v31  ;;  %v1161_v34 = vmax.f32 %v987_v10, 0.0 }
 0x1fc   : > { %v1162_v4 = vmax.f32 %v989_v28, 0.0  ;;  %v992_v47 = vpop.f32.mrb[42].mxu1 }
 0x1fd   : > { %v993_v24 = vadd.f32 %v992_v47, %v2813_v50  ;;  %v994_v35 = vpop.f32.mrb[43].mxu1 }
 0x1fe   : > { %v995_v62 = vadd.f32 %v994_v35, %v2816_v48  ;;  %1381 = vmatprep.mubr.f32.mxu0 %v1162_v4 }
 0x1ff   : > { %1382 = vmatmul.mubr.f32.gmra.mrb[40].mxu0 %v1161_v34  ;;  %v1163_v19 = vmax.f32 %v993_v24, 0.0 }
 0x200   : > { %v1164_v42 = vmax.f32 %v995_v62, 0.0  ;;  %v998_v38 = vpop.f32.mrb[44].mxu1 }
 0x201   : > { %v999_v40 = vadd.f32 %v998_v38, %v2813_v50  ;;  %v1000_v41 = vpop.f32.mrb[45].mxu1 }
 0x202   : > { %v1001_v60 = vadd.f32 %v1000_v41, %v2816_v48  ;;  %1387 = vmatprep.mubr.f32.mxu0 %v1164_v42 }
 0x203   : > { %1388 = vmatmul.mubr.f32.gmra.mrb[42].mxu0 %v1163_v19  ;;  %v1165_v18 = vmax.f32 %v999_v40, 0.0 }
 0x204   : > { %v1166_v37 = vmax.f32 %v1001_v60, 0.0  ;;  %v1004_v43 = vpop.f32.mrb[46].mxu1 }
 0x205   : > { %v1005_v55 = vadd.f32 %v1004_v43, %v2813_v50  ;;  %v1006_v45 = vpop.f32.mrb[47].mxu1 }
 0x206   : > { %v1007_v46 = vadd.f32 %v1006_v45, %v2816_v48  ;;  %1393 = vmatprep.mubr.f32.mxu0 %v1166_v37 }
 0x207   : > { %1394 = vmatmul.mubr.f32.gmra.mrb[44].mxu0 %v1165_v18  ;;  %v1167_v49 = vmax.f32 %v1005_v55, 0.0 }
 0x208   : > { %v1168_v39 = vmax.f32 %v1007_v46, 0.0  ;;  %v1010_v13 = vpop.f32.mrb[48].mxu1 }
 0x209   : > { %v1011_v59 = vadd.f32 %v1010_v13, %v2813_v50  ;;  %v1012_v33 = vpop.f32.mrb[49].mxu1 }
 0x20a   : > { %v1013_v21 = vadd.f32 %v1012_v33, %v2816_v48  ;;  %1399 = vmatprep.mubr.f32.mxu0 %v1168_v39 }
 0x20b   : > { %1400 = vmatmul.mubr.f32.gmra.mrb[46].mxu0 %v1167_v49  ;;  %v1169_v14 = vmax.f32 %v1011_v59, 0.0 }
 0x20c   : > { %v1170_v53 = vmax.f32 %v1013_v21, 0.0  ;;  %v1016_v44 = vpop.f32.mrb[50].mxu1 }
 0x20d   : > { %v1017_v3 = vadd.f32 %v1016_v44, %v2813_v50  ;;  %v1018_v36 = vpop.f32.mrb[51].mxu1 }
 0x20e   : > { %v1019_v32 = vadd.f32 %v1018_v36, %v2816_v48  ;;  %1405 = vmatprep.mubr.f32.mxu0 %v1170_v53 }
 0x20f   : > { %1406 = vmatmul.mubr.f32.gmra.mrb[48].mxu0 %v1169_v14  ;;  %v1171_v51 = vmax.f32 %v1017_v3, 0.0 }
 0x210   : > { %v1172_v61 = vmax.f32 %v1019_v32, 0.0  ;;  %v1022_v25 = vpop.f32.mrb[52].mxu1 }
 0x211   : > { %v1023_v54 = vadd.f32 %v1022_v25, %v2813_v50  ;;  %v1024_v56 = vpop.f32.mrb[53].mxu1 }
 0x212   : > { %v1025_v57 = vadd.f32 %v1024_v56, %v2816_v48  ;;  %1411 = vmatprep.mubr.f32.mxu0 %v1172_v61 }
 0x213   : > { %1412 = vmatmul.mubr.f32.gmra.mrb[50].mxu0 %v1171_v51  ;;  %v1173_v63 = vmax.f32 %v1023_v54, 0.0 }
 0x214   : > { %v1174_v58 = vmax.f32 %v1025_v57, 0.0  ;;  %v1028_v0 = vpop.f32.mrb[54].mxu1 }
 0x215   : > { %v1029_v1 = vadd.f32 %v1028_v0, %v2813_v50  ;;  %v1030_v2 = vpop.f32.mrb[55].mxu1 }
 0x216   : > { %v1031_v5 = vadd.f32 %v1030_v2, %v2816_v48  ;;  %1417 = vmatprep.mubr.f32.mxu0 %v1174_v58 }
 0x217   : > { %1418 = vmatmul.mubr.f32.gmra.mrb[52].mxu0 %v1173_v63  ;;  %v1175_v12 = vmax.f32 %v1029_v1, 0.0 }
 0x218   : > { %v1176_v7 = vmax.f32 %v1031_v5, 0.0  ;;  %v1034_v11 = vpop.f32.mrb[56].mxu1 }
 0x219   : > { %v1035_v15 = vadd.f32 %v1034_v11, %v2813_v50  ;;  %v1036_v29 = vpop.f32.mrb[57].mxu1 }
 0x21a   : > { %v1037_v16 = vadd.f32 %v1036_v29, %v2816_v48  ;;  %1423 = vmatprep.mubr.f32.mxu0 %v1176_v7 }
 0x21b   : > { %1424 = vmatmul.mubr.f32.gmra.mrb[54].mxu0 %v1175_v12  ;;  %v1177_v22 = vmax.f32 %v1035_v15, 0.0 }
 0x21c   : > { %v1178_v17 = vmax.f32 %v1037_v16, 0.0  ;;  %v1040_v20 = vpop.f32.mrb[58].mxu1 }
 0x21d   : > { %v1041_v23 = vadd.f32 %v1040_v20, %v2813_v50  ;;  %v1042_v26 = vpop.f32.mrb[59].mxu1 }
 0x21e   : > { %v1043_v27 = vadd.f32 %v1042_v26, %v2816_v48  ;;  %1429 = vmatprep.mubr.f32.mxu0 %v1178_v17 }
 0x21f   : > { %1430 = vmatmul.mubr.f32.gmra.mrb[56].mxu0 %v1177_v22  ;;  %v1179_v31 = vmax.f32 %v1041_v23, 0.0 }
 0x220   : > { %v1180_v30 = vmax.f32 %v1043_v27, 0.0  ;;  %v1046_v9 = vpop.f32.mrb[60].mxu1 }
 0x221   : > { %v1047_v10 = vadd.f32 %v1046_v9, %v2813_v50  ;;  %v1048_v52 = vpop.f32.mrb[61].mxu1 }
 0x222   : > { %v1049_v28 = vadd.f32 %v1048_v52, %v2816_v48  ;;  %1435 = vmatprep.mubr.f32.mxu0 %v1180_v30 }
 0x223   : > { %1436 = vmatmul.mubr.f32.gmra.mrb[58].mxu0 %v1179_v31  ;;  %v1181_v34 = vmax.f32 %v1047_v10, 0.0 }
 0x224   : > { %v1182_v4 = vmax.f32 %v1049_v28, 0.0  ;;  %v1052_v47 = vpop.f32.mrb[62].mxu1 }
 0x225   : > { %v1053_v24 = vadd.f32 %v1052_v47, %v2813_v50  ;;  %v1054_v35 = vpop.f32.mrb[63].mxu1 }
 0x226   : > { %v1055_v62 = vadd.f32 %v1054_v35, %v2816_v48  ;;  %1441 = vmatprep.mubr.f32.mxu0 %v1182_v4 }
 0x227   : > { %1442 = vmatmul.mubr.f32.gmra.mrb[60].mxu0 %v1181_v34  ;;  %v1183_v19 = vmax.f32 %v1053_v24, 0.0 }
 0x228   : > { %v1184_v42 = vmax.f32 %v1055_v62, 0.0  ;;  %v1058_v38 = vpop.f32.mrb[64].mxu1 }
 0x229   : > { %v1059_v40 = vadd.f32 %v1058_v38, %v2813_v50  ;;  %v1060_v41 = vpop.f32.mrb[65].mxu1 }
 0x22a   : > { %v1061_v60 = vadd.f32 %v1060_v41, %v2816_v48  ;;  %1447 = vmatprep.mubr.f32.mxu0 %v1184_v42 }
 0x22b   : > { %1448 = vmatmul.mubr.f32.gmra.mrb[62].mxu0 %v1183_v19  ;;  %v1185_v18 = vmax.f32 %v1059_v40, 0.0 }
 0x22c   : > { %v1186_v37 = vmax.f32 %v1061_v60, 0.0  ;;  %v1064_v43 = vpop.f32.mrb[66].mxu1 }
 0x22d   : > { %v1065_v55 = vadd.f32 %v1064_v43, %v2813_v50  ;;  %v1066_v45 = vpop.f32.mrb[67].mxu1 }
 0x22e   : > { %v1067_v46 = vadd.f32 %v1066_v45, %v2816_v48  ;;  %1453 = vmatprep.mubr.f32.mxu0 %v1186_v37 }
 0x22f   : > { %1454 = vmatmul.mubr.f32.gmra.mrb[64].mxu0 %v1185_v18  ;;  %v1187_v49 = vmax.f32 %v1065_v55, 0.0 }
 0x230   : > { %v1188_v39 = vmax.f32 %v1067_v46, 0.0  ;;  %v1070_v13 = vpop.f32.mrb[68].mxu1 }
 0x231   : > { %v1071_v59 = vadd.f32 %v1070_v13, %v2813_v50  ;;  %v1072_v33 = vpop.f32.mrb[69].mxu1 }
 0x232   : > { %v1073_v21 = vadd.f32 %v1072_v33, %v2816_v48  ;;  %1459 = vmatprep.mubr.f32.mxu0 %v1188_v39 }
 0x233   : > { %1460 = vmatmul.mubr.f32.gmra.mrb[66].mxu0 %v1187_v49  ;;  %v1189_v14 = vmax.f32 %v1071_v59, 0.0 }
 0x234   : > { %v1190_v53 = vmax.f32 %v1073_v21, 0.0  ;;  %v1076_v44 = vpop.f32.mrb[70].mxu1 }
 0x235   : > { %v1077_v3 = vadd.f32 %v1076_v44, %v2813_v50  ;;  %v1078_v36 = vpop.f32.mrb[71].mxu1 }
 0x236   : > { %v1079_v32 = vadd.f32 %v1078_v36, %v2816_v48  ;;  %1465 = vmatprep.mubr.f32.mxu0 %v1190_v53 }
 0x237   : > { %1466 = vmatmul.mubr.f32.gmra.mrb[68].mxu0 %v1189_v14  ;;  %v1191_v51 = vmax.f32 %v1077_v3, 0.0 }
 0x238   : > { %v1192_v61 = vmax.f32 %v1079_v32, 0.0  ;;  %v1082_v25 = vpop.f32.mrb[72].mxu1 }
 0x239   : > { %v1083_v54 = vadd.f32 %v1082_v25, %v2813_v50  ;;  %v1084_v56 = vpop.f32.mrb[73].mxu1 }
 0x23a   : > { %v1085_v57 = vadd.f32 %v1084_v56, %v2816_v48  ;;  %1471 = vmatprep.mubr.f32.mxu0 %v1192_v61 }
 0x23b   : > { %1472 = vmatmul.mubr.f32.gmra.mrb[70].mxu0 %v1191_v51  ;;  %v1193_v63 = vmax.f32 %v1083_v54, 0.0 }
 0x23c   : > { %v1194_v58 = vmax.f32 %v1085_v57, 0.0  ;;  %v1088_v0 = vpop.f32.mrb[74].mxu1 }
 0x23d   : > { %v1089_v1 = vadd.f32 %v1088_v0, %v2813_v50  ;;  %v1090_v2 = vpop.f32.mrb[75].mxu1 }
 0x23e   : > { %v1091_v5 = vadd.f32 %v1090_v2, %v2816_v48  ;;  %1477 = vmatprep.mubr.f32.mxu0 %v1194_v58 }
 0x23f   : > { %1478 = vmatmul.mubr.f32.gmra.mrb[72].mxu0 %v1193_v63  ;;  %v1195_v12 = vmax.f32 %v1089_v1, 0.0 }
 0x240   : > { %v1196_v7 = vmax.f32 %v1091_v5, 0.0  ;;  %v1094_v11 = vpop.f32.mrb[76].mxu1 }
 0x241   : > { %v1095_v15 = vadd.f32 %v1094_v11, %v2813_v50  ;;  %v1096_v29 = vpop.f32.mrb[77].mxu1 }
 0x242   : > { %v1097_v16 = vadd.f32 %v1096_v29, %v2816_v48  ;;  %1483 = vmatprep.mubr.f32.mxu0 %v1196_v7 }
 0x243   : > { %1484 = vmatmul.mubr.f32.gmra.mrb[74].mxu0 %v1195_v12  ;;  %v1197_v22 = vmax.f32 %v1095_v15, 0.0  ;;  %v1281_v12 = vld [vmem:[%s3019_s6] sm:$0x3] }
 0x244   : > { %v1198_v17 = vmax.f32 %v1097_v16, 0.0  ;;  %v1100_v20 = vpop.f32.mrb[78].mxu1  ;;  %v2886_v15 = vrot.slane %v1281_v12, %v2636_v6  ;;  %v2889_v16 = vrot.slane %v1281_v12, %v2641_v8 }
 0x245   : > { %v1101_v23 = vadd.f32 %v1100_v20, %v2813_v50  ;;  %v1102_v26 = vpop.f32.mrb[79].mxu1 }
 0x246   : > { %v1103_v27 = vadd.f32 %v1102_v26, %v2816_v48  ;;  %1489 = vmatprep.mubr.f32.mxu0 %v1198_v17  ;;  %v2897_v26 = vld.sshfl [vmem:[%s3020_s7] sm:$0x33 pattern:$0x76325410] }
 0x247   : > { %1490 = vmatmul.mubr.f32.gmra.mrb[76].mxu0 %v1197_v22  ;;  %v1199_v31 = vmax.f32 %v1101_v23, 0.0  ;;  %v1629_v8 = vcombine.high %v2897_v26, %v2897_v26 }
 0x248   : > { %v1200_v30 = vmax.f32 %v1103_v27, 0.0  ;;  %v1106_v9 = vpop.f32.mrb[80].mxu1 }
 0x249   : > { %v1107_v10 = vadd.f32 %v1106_v9, %v2813_v50  ;;  %v1108_v52 = vpop.f32.mrb[81].mxu1  ;;  %1696 = vmatprep.mubr.f32.mxu1 %v1629_v8 }
 0x24a   : > { %v1109_v28 = vadd.f32 %v1108_v52, %v2816_v48  ;;  %1495 = vmatprep.mubr.f32.mxu0 %v1200_v30 }
 0x24b   : > { %1496 = vmatmul.mubr.f32.gmra.mrb[78].mxu0 %v1199_v31  ;;  %v1201_v34 = vmax.f32 %v1107_v10, 0.0 }
 0x24c   : > { %v1202_v4 = vmax.f32 %v1109_v28, 0.0  ;;  %v1112_v47 = vpop.f32.mrb[82].mxu1 }
 0x24d   : > { %v1113_v24 = vadd.f32 %v1112_v47, %v2813_v50  ;;  %v1114_v35 = vpop.f32.mrb[83].mxu1 }
 0x24e   : > { %v1115_v62 = vadd.f32 %v1114_v35, %v2816_v48  ;;  %1501 = vmatprep.mubr.f32.mxu0 %v1202_v4  ;;  %v1615_v35 = vld [vmem:[%s3021_s8] sm:$0x3] }
 0x24f   : > { %1502 = vmatmul.mubr.f32.gmra.mrb[80].mxu0 %v1201_v34  ;;  %v1203_v19 = vmax.f32 %v1113_v24, 0.0 }
 0x250   : > { %v1204_v42 = vmax.f32 %v1115_v62, 0.0  ;;  %v1118_v38 = vpop.f32.mrb[84].mxu1 }
 0x251   : > { %v1119_v40 = vadd.f32 %v1118_v38, %v2813_v50  ;;  %v1120_v41 = vpop.f32.mrb[85].mxu1  ;;  %v2201_v38 = vmov 0  }
 0x252   : > { %v1121_v60 = vadd.f32 %v1120_v41, %v2816_v48  ;;  %1507 = vmatprep.mubr.f32.mxu0 %v1204_v42  ;;  %2100 = vset.pattern.permute.xlu0 %v2201_v38 }
 0x253   : > { %1508 = vmatmul.mubr.f32.gmra.mrb[82].mxu0 %v1203_v19  ;;  %v1205_v18 = vmax.f32 %v1119_v40, 0.0  ;;  %1618 = vperm.xlu0 %2100, %v1615_v35  }
 0x254   : > { %v1206_v37 = vmax.f32 %v1121_v60, 0.0  ;;  %v1124_v43 = vpop.f32.mrb[86].mxu1 }
 0x255   : > { %v1125_v55 = vadd.f32 %v1124_v43, %v2813_v50  ;;  %v1126_v45 = vpop.f32.mrb[87].mxu1 }
 0x256   : > { %v1127_v46 = vadd.f32 %v1126_v45, %v2816_v48  ;;  %1513 = vmatprep.mubr.f32.mxu0 %v1206_v37 }
 0x257   : > { %1514 = vmatmul.mubr.f32.gmra.mrb[84].mxu0 %v1205_v18  ;;  %v1207_v49 = vmax.f32 %v1125_v55, 0.0 }
 0x258   : > { %v1208_v39 = vmax.f32 %v1127_v46, 0.0  ;;  %v1130_v13 = vpop.f32.mrb[88].mxu1 }
 0x259   : > { %v1131_v59 = vadd.f32 %v1130_v13, %v2813_v50  ;;  %v1132_v33 = vpop.f32.mrb[89].mxu1 }
 0x25a   : > { %v1133_v21 = vadd.f32 %v1132_v33, %v2816_v48  ;;  %1519 = vmatprep.mubr.f32.mxu0 %v1208_v39 }
 0x25b   : > { %1520 = vmatmul.mubr.f32.gmra.mrb[86].mxu0 %v1207_v49  ;;  %v1209_v14 = vmax.f32 %v1131_v59, 0.0 }
 0x25c   : > { %v1210_v53 = vmax.f32 %v1133_v21, 0.0  ;;  %v1136_v44 = vpop.f32.mrb[90].mxu1 }
 0x25d   : > { %v1137_v3 = vadd.f32 %v1136_v44, %v2813_v50  ;;  %v1138_v36 = vpop.f32.mrb[91].mxu1 }
 0x25e   : > { %v1139_v32 = vadd.f32 %v1138_v36, %v2816_v48  ;;  %1525 = vmatprep.mubr.f32.mxu0 %v1210_v53 }
 0x25f   : > { %1526 = vmatmul.mubr.f32.gmra.mrb[88].mxu0 %v1209_v14  ;;  %v1211_v51 = vmax.f32 %v1137_v3, 0.0 }
 0x260   : > { %v1212_v61 = vmax.f32 %v1139_v32, 0.0  ;;  %v1142_v25 = vpop.f32.mrb[92].mxu1 }
 0x261   : > { %v1143_v54 = vadd.f32 %v1142_v25, %v2813_v50  ;;  %v1144_v56 = vpop.f32.mrb[93].mxu1 }
 0x262   : > { %v1145_v57 = vadd.f32 %v1144_v56, %v2816_v48  ;;  %1531 = vmatprep.mubr.f32.mxu0 %v1212_v61 }
 0x263   : > { %1532 = vmatmul.mubr.f32.gmra.mrb[90].mxu0 %v1211_v51  ;;  %v1213_v63 = vmax.f32 %v1143_v54, 0.0 }
 0x264   : > { %v1214_v58 = vmax.f32 %v1145_v57, 0.0  ;;  %v1148_v0 = vpop.f32.mrb[94].mxu1 }
 0x265   : > { %v1149_v1 = vadd.f32 %v1148_v0, %v2813_v50  ;;  %v1150_v2 = vpop.f32.mrb[95].mxu1 }
 0x266   : > { %v1151_v5 = vadd.f32 %v1150_v2, %v2816_v48  ;;  %1537 = vmatprep.mubr.f32.mxu0 %v1214_v58 }
 0x267   : > { %1538 = vmatmul.mubr.f32.gmra.mrb[92].mxu0 %v1213_v63  ;;  %v1215_v11 = vmax.f32 %v1149_v1, 0.0 }
 0x268   : > { %v1216_v7 = vmax.f32 %v1151_v5, 0.0 }
 0x26a   : > { %1543 = vmatprep.mubr.f32.mxu0 %v1216_v7 }
 0x26b   : > { %1544 = vmatmul.mubr.f32.gmra.mrb[94].mxu0 %v1215_v11 }
 0x2c2   : > { %v1359_v29 = vpop.f32.mrb[32].mxu0 }
 0x2c3   : > { %v1361_v50 = vpop.f32.mrb[33].mxu0  ;;  %v1360_v48 = vadd.f32 %v1359_v29, %v2886_v15 }
 0x2c4   : > { %v1362_v17 = vadd.f32 %v1361_v50, %v2889_v16 }
 0x2c5   : > { %v1550_v27 = vmax.f32 %v1360_v48, 0.0 }
 0x2c6   : > { %v1365_v20 = vpop.f32.mrb[34].mxu0  ;;  %v1551_v9 = vmax.f32 %v1362_v17, 0.0 }
 0x2c7   : > { %v1366_v22 = vadd.f32 %v1365_v20, %v2886_v15  ;;  %v1367_v23 = vpop.f32.mrb[35].mxu0 }
 0x2c8   : > { %v1368_v6 = vadd.f32 %v1367_v23, %v2889_v16 }
 0x2c9   : > { %v1552_v30 = vmax.f32 %v1366_v22, 0.0 }
 0x2ca   : > { %v1553_v31 = vmax.f32 %v1368_v6, 0.0  ;;  %v1371_v10 = vpop.f32.mrb[36].mxu0 }
 0x2cb   : > { %v1982_v52 = vpack.c.bf16 %v1552_v30, %v1550_v27  ;;  %v1373_v28 = vpop.f32.mrb[37].mxu0  ;;  %v1372_v47 = vadd.f32 %v1371_v10, %v2886_v15 }
 0x2cc   : > { %v1980_v4 = vpack.c.bf16 %v1553_v31, %v1551_v9  ;;  %v1374_v34 = vadd.f32 %v1373_v28, %v2889_v16 }
 0x2cd   : > { %v1554_v40 = vmax.f32 %v1372_v47, 0.0 }
 0x2ce   : > { %v1377_v24 = vpop.f32.mrb[38].mxu0  ;;  %1981 = vmatprep.subr.bf16.mxu1 %v1980_v4  ;;  %v1555_v60 = vmax.f32 %v1374_v34, 0.0 }
 0x2cf   : > { %v1378_v62 = vadd.f32 %v1377_v24, %v2886_v15  ;;  %v1379_v42 = vpop.f32.mrb[39].mxu0  ;;  %1983 = vmatpush1.bf16.xpose.msra.mxu1 %v1982_v52 }
 0x2d0   : > { %v1380_v19 = vadd.f32 %v1379_v42, %v2889_v16 }
 0x2d1   : > { %v1556_v41 = vmax.f32 %v1378_v62, 0.0 }
 0x2d2   : > { %v1557_v37 = vmax.f32 %v1380_v19, 0.0  ;;  %v1383_v43 = vpop.f32.mrb[40].mxu0 }
 0x2d3   : > { %v1986_v18 = vpack.c.bf16 %v1556_v41, %v1554_v40  ;;  %v1385_v55 = vpop.f32.mrb[41].mxu0  ;;  %v1384_v46 = vadd.f32 %v1383_v43, %v2886_v15 }
 0x2d4   : > { %v1984_v45 = vpack.c.bf16 %v1557_v37, %v1555_v60  ;;  %v1386_v39 = vadd.f32 %v1385_v55, %v2889_v16 }
 0x2d5   : > { %v1558_v21 = vmax.f32 %v1384_v46, 0.0 }
 0x2d6   : > { %v1389_v13 = vpop.f32.mrb[42].mxu0  ;;  %1985 = vmatprep.subr.bf16.mxu1 %v1984_v45  ;;  %v1559_v44 = vmax.f32 %v1386_v39, 0.0 }
 0x2d7   : > { %v1390_v49 = vadd.f32 %v1389_v13, %v2886_v15  ;;  %v1391_v59 = vpop.f32.mrb[43].mxu0  ;;  %1987 = vmatpush1.bf16.xpose.msra.mxu1 %v1986_v18 }
 0x2d8   : > { %v1392_v33 = vadd.f32 %v1391_v59, %v2889_v16 }
 0x2d9   : > { %v1560_v53 = vmax.f32 %v1390_v49, 0.0 }
 0x2da   : > { %v1561_v14 = vmax.f32 %v1392_v33, 0.0  ;;  %v1395_v3 = vpop.f32.mrb[44].mxu0 }
 0x2db   : > { %v1990_v36 = vpack.c.bf16 %v1560_v53, %v1558_v21  ;;  %v1397_v32 = vpop.f32.mrb[45].mxu0  ;;  %v1396_v25 = vadd.f32 %v1395_v3, %v2886_v15 }
 0x2dc   : > { %v1988_v61 = vpack.c.bf16 %v1561_v14, %v1559_v44  ;;  %v1398_v51 = vadd.f32 %v1397_v32, %v2889_v16 }
 0x2dd   : > { %v1562_v0 = vmax.f32 %v1396_v25, 0.0 }
 0x2de   : > { %v1401_v54 = vpop.f32.mrb[46].mxu0  ;;  %1989 = vmatprep.subr.bf16.mxu1 %v1988_v61  ;;  %v1563_v1 = vmax.f32 %v1398_v51, 0.0 }
 0x2df   : > { %v1402_v56 = vadd.f32 %v1401_v54, %v2886_v15  ;;  %v1403_v57 = vpop.f32.mrb[47].mxu0  ;;  %1991 = vmatpush1.bf16.xpose.msra.mxu1 %v1990_v36 }
 0x2e0   : > { %v1404_v58 = vadd.f32 %v1403_v57, %v2889_v16 }
 0x2e1   : > { %v1564_v63 = vmax.f32 %v1402_v56, 0.0 }
 0x2e2   : > { %v1565_v2 = vmax.f32 %v1404_v58, 0.0  ;;  %v1407_v5 = vpop.f32.mrb[48].mxu0 }
 0x2e3   : > { %v1994_v7 = vpack.c.bf16 %v1564_v63, %v1562_v0  ;;  %v1409_v11 = vpop.f32.mrb[49].mxu0  ;;  %v1408_v29 = vadd.f32 %v1407_v5, %v2886_v15 }
 0x2e4   : > { %v1992_v12 = vpack.c.bf16 %v1565_v2, %v1563_v1  ;;  %v1410_v50 = vadd.f32 %v1409_v11, %v2889_v16 }
 0x2e5   : > { %v1566_v23 = vmax.f32 %v1408_v29, 0.0 }
 0x2e6   : > { %v1413_v48 = vpop.f32.mrb[50].mxu0  ;;  %1993 = vmatprep.subr.bf16.mxu1 %v1992_v12  ;;  %v1567_v8 = vmax.f32 %v1410_v50, 0.0 }
 0x2e7   : > { %v1414_v17 = vadd.f32 %v1413_v48, %v2886_v15  ;;  %v1415_v20 = vpop.f32.mrb[51].mxu0  ;;  %1995 = vmatpush1.bf16.xpose.msra.mxu1 %v1994_v7 }
 0x2e8   : > { %v1416_v22 = vadd.f32 %v1415_v20, %v2889_v16 }
 0x2e9   : > { %v1568_v6 = vmax.f32 %v1414_v17, 0.0 }
 0x2ea   : > { %v1569_v27 = vmax.f32 %v1416_v22, 0.0  ;;  %v1419_v30 = vpop.f32.mrb[52].mxu0 }
 0x2eb   : > { %v1998_v9 = vpack.c.bf16 %v1568_v6, %v1566_v23  ;;  %v1421_v31 = vpop.f32.mrb[53].mxu0  ;;  %v1420_v52 = vadd.f32 %v1419_v30, %v2886_v15 }
 0x2ec   : > { %v1996_v10 = vpack.c.bf16 %v1569_v27, %v1567_v8  ;;  %v1422_v28 = vadd.f32 %v1421_v31, %v2889_v16 }
 0x2ed   : > { %v1570_v35 = vmax.f32 %v1420_v52, 0.0 }
 0x2ee   : > { %v1425_v4 = vpop.f32.mrb[54].mxu0  ;;  %1997 = vmatprep.subr.bf16.mxu1 %v1996_v10  ;;  %v1571_v42 = vmax.f32 %v1422_v28, 0.0 }
 0x2ef   : > { %v1426_v47 = vadd.f32 %v1425_v4, %v2886_v15  ;;  %v1427_v34 = vpop.f32.mrb[55].mxu0  ;;  %1999 = vmatpush1.bf16.xpose.msra.mxu1 %v1998_v9 }
 0x2f0   : > { %v1428_v24 = vadd.f32 %v1427_v34, %v2889_v16 }
 0x2f1   : > { %v1572_v62 = vmax.f32 %v1426_v47, 0.0 }
 0x2f2   : > { %v1573_v38 = vmax.f32 %v1428_v24, 0.0  ;;  %v1431_v19 = vpop.f32.mrb[56].mxu0 }
 0x2f3   : > { %v2002_v40 = vpack.c.bf16 %v1572_v62, %v1570_v35  ;;  %v1433_v41 = vpop.f32.mrb[57].mxu0  ;;  %v1432_v37 = vadd.f32 %v1431_v19, %v2886_v15 }
 0x2f4   : > { %v2000_v60 = vpack.c.bf16 %v1573_v38, %v1571_v42  ;;  %v1434_v43 = vadd.f32 %v1433_v41, %v2889_v16 }
 0x2f5   : > { %v1574_v39 = vmax.f32 %v1432_v37, 0.0 }
 0x2f6   : > { %v1437_v18 = vpop.f32.mrb[58].mxu0  ;;  %2001 = vmatprep.subr.bf16.mxu1 %v2000_v60  ;;  %v1575_v49 = vmax.f32 %v1434_v43, 0.0 }
 0x2f7   : > { %v1438_v55 = vadd.f32 %v1437_v18, %v2886_v15  ;;  %v1439_v45 = vpop.f32.mrb[59].mxu0  ;;  %2003 = vmatpush1.bf16.xpose.msra.mxu1 %v2002_v40 }
 0x2f8   : > { %v1440_v46 = vadd.f32 %v1439_v45, %v2889_v16 }
 0x2f9   : > { %v1576_v13 = vmax.f32 %v1438_v55, 0.0 }
 0x2fa   : > { %v1577_v59 = vmax.f32 %v1440_v46, 0.0  ;;  %v1443_v33 = vpop.f32.mrb[60].mxu0 }
 0x2fb   : > { %v2006_v21 = vpack.c.bf16 %v1576_v13, %v1574_v39  ;;  %v1445_v53 = vpop.f32.mrb[61].mxu0  ;;  %v1444_v14 = vadd.f32 %v1443_v33, %v2886_v15 }
 0x2fc   : > { %v2004_v44 = vpack.c.bf16 %v1577_v59, %v1575_v49  ;;  %v1446_v3 = vadd.f32 %v1445_v53, %v2889_v16 }
 0x2fd   : > { %v1578_v51 = vmax.f32 %v1444_v14, 0.0 }
 0x2fe   : > { %v1449_v36 = vpop.f32.mrb[62].mxu0  ;;  %2005 = vmatprep.subr.bf16.mxu1 %v2004_v44  ;;  %v1579_v56 = vmax.f32 %v1446_v3, 0.0 }
 0x2ff   : > { %v1450_v32 = vadd.f32 %v1449_v36, %v2886_v15  ;;  %v1451_v61 = vpop.f32.mrb[63].mxu0  ;;  %2007 = vmatpush1.bf16.xpose.msra.mxu1 %v2006_v21 }
 0x300   : > { %v1452_v25 = vadd.f32 %v1451_v61, %v2889_v16 }
 0x301   : > { %v1580_v54 = vmax.f32 %v1450_v32, 0.0 }
 0x302   : > { %v1581_v57 = vmax.f32 %v1452_v25, 0.0  ;;  %v1455_v58 = vpop.f32.mrb[64].mxu0 }
 0x303   : > { %v2010_v0 = vpack.c.bf16 %v1580_v54, %v1578_v51  ;;  %v1457_v63 = vpop.f32.mrb[65].mxu0  ;;  %v1456_v2 = vadd.f32 %v1455_v58, %v2886_v15 }
 0x304   : > { %v2008_v1 = vpack.c.bf16 %v1581_v57, %v1579_v56  ;;  %v1458_v5 = vadd.f32 %v1457_v63, %v2889_v16 }
 0x305   : > { %v1582_v50 = vmax.f32 %v1456_v2, 0.0 }
 0x306   : > { %v1461_v7 = vpop.f32.mrb[66].mxu0  ;;  %2009 = vmatprep.subr.bf16.mxu1 %v2008_v1  ;;  %v1583_v17 = vmax.f32 %v1458_v5, 0.0 }
 0x307   : > { %v1462_v11 = vadd.f32 %v1461_v7, %v2886_v15  ;;  %v1463_v12 = vpop.f32.mrb[67].mxu0  ;;  %2011 = vmatpush1.bf16.xpose.msra.mxu1 %v2010_v0 }
 0x308   : > { %v1464_v29 = vadd.f32 %v1463_v12, %v2889_v16 }
 0x309   : > { %v1584_v48 = vmax.f32 %v1462_v11, 0.0 }
 0x30a   : > { %v1585_v20 = vmax.f32 %v1464_v29, 0.0  ;;  %v1467_v22 = vpop.f32.mrb[68].mxu0 }
 0x30b   : > { %v2014_v23 = vpack.c.bf16 %v1584_v48, %v1582_v50  ;;  %v1469_v6 = vpop.f32.mrb[69].mxu0  ;;  %v1468_v27 = vadd.f32 %v1467_v22, %v2886_v15 }
 0x30c   : > { %v2012_v8 = vpack.c.bf16 %v1585_v20, %v1583_v17  ;;  %v1470_v30 = vadd.f32 %v1469_v6, %v2889_v16 }
 0x30d   : > { %v1586_v28 = vmax.f32 %v1468_v27, 0.0 }
 0x30e   : > { %v1473_v9 = vpop.f32.mrb[70].mxu0  ;;  %2013 = vmatprep.subr.bf16.mxu1 %v2012_v8  ;;  %v1587_v47 = vmax.f32 %v1470_v30, 0.0 }
 0x30f   : > { %v1474_v31 = vadd.f32 %v1473_v9, %v2886_v15  ;;  %v1475_v10 = vpop.f32.mrb[71].mxu0  ;;  %2015 = vmatpush1.bf16.xpose.msra.mxu1 %v2014_v23 }
 0x310   : > { %v1476_v52 = vadd.f32 %v1475_v10, %v2889_v16 }
 0x311   : > { %v1588_v4 = vmax.f32 %v1474_v31, 0.0 }
 0x312   : > { %v1589_v34 = vmax.f32 %v1476_v52, 0.0  ;;  %v1479_v24 = vpop.f32.mrb[72].mxu0 }
 0x313   : > { %v2018_v35 = vpack.c.bf16 %v1588_v4, %v1586_v28  ;;  %v1481_v62 = vpop.f32.mrb[73].mxu0  ;;  %v1480_v38 = vadd.f32 %v1479_v24, %v2886_v15 }
 0x314   : > { %v2016_v42 = vpack.c.bf16 %v1589_v34, %v1587_v47  ;;  %v1482_v19 = vadd.f32 %v1481_v62, %v2889_v16 }
 0x315   : > { %v1590_v43 = vmax.f32 %v1480_v38, 0.0 }
 0x316   : > { %v1485_v40 = vpop.f32.mrb[74].mxu0  ;;  %2017 = vmatprep.subr.bf16.mxu1 %v2016_v42  ;;  %v1591_v55 = vmax.f32 %v1482_v19, 0.0 }
 0x317   : > { %v1486_v41 = vadd.f32 %v1485_v40, %v2886_v15  ;;  %v1487_v60 = vpop.f32.mrb[75].mxu0  ;;  %2019 = vmatpush1.bf16.xpose.msra.mxu1 %v2018_v35 }
 0x318   : > { %v1488_v37 = vadd.f32 %v1487_v60, %v2889_v16 }
 0x319   : > { %v1592_v18 = vmax.f32 %v1486_v41, 0.0 }
 0x31a   : > { %v1593_v45 = vmax.f32 %v1488_v37, 0.0  ;;  %v1491_v46 = vpop.f32.mrb[76].mxu0 }
 0x31b   : > { %v2022_v39 = vpack.c.bf16 %v1592_v18, %v1590_v43  ;;  %v1493_v13 = vpop.f32.mrb[77].mxu0  ;;  %v1492_v59 = vadd.f32 %v1491_v46, %v2886_v15 }
 0x31c   : > { %v2020_v49 = vpack.c.bf16 %v1593_v45, %v1591_v55  ;;  %v1494_v33 = vadd.f32 %v1493_v13, %v2889_v16 }
 0x31d   : > { %v1594_v3 = vmax.f32 %v1492_v59, 0.0 }
 0x31e   : > { %v1497_v21 = vpop.f32.mrb[78].mxu0  ;;  %2021 = vmatprep.subr.bf16.mxu1 %v2020_v49  ;;  %v1595_v32 = vmax.f32 %v1494_v33, 0.0 }
 0x31f   : > { %v1498_v53 = vadd.f32 %v1497_v21, %v2886_v15  ;;  %v1499_v44 = vpop.f32.mrb[79].mxu0  ;;  %2023 = vmatpush1.bf16.xpose.msra.mxu1 %v2022_v39 }
 0x320   : > { %v1500_v14 = vadd.f32 %v1499_v44, %v2889_v16 }
 0x321   : > { %v1596_v36 = vmax.f32 %v1498_v53, 0.0 }
 0x322   : > { %v1597_v61 = vmax.f32 %v1500_v14, 0.0  ;;  %v1503_v25 = vpop.f32.mrb[80].mxu0 }
 0x323   : > { %v2026_v51 = vpack.c.bf16 %v1596_v36, %v1594_v3  ;;  %v1505_v54 = vpop.f32.mrb[81].mxu0  ;;  %v1504_v57 = vadd.f32 %v1503_v25, %v2886_v15  ;;  %v1619_v36 = vpop.permute.xlu0 %1618 }
 0x324   : > { %v2024_v56 = vpack.c.bf16 %v1597_v61, %v1595_v32  ;;  %v1506_v58 = vadd.f32 %v1505_v54, %v2889_v16 }
 0x325   : > { %v1598_v5 = vmax.f32 %v1504_v57, 0.0 }
 0x326   : > { %v1509_v0 = vpop.f32.mrb[82].mxu0  ;;  %2025 = vmatprep.subr.bf16.mxu1 %v2024_v56  ;;  %v1599_v11 = vmax.f32 %v1506_v58, 0.0 }
 0x327   : > { %v1510_v63 = vadd.f32 %v1509_v0, %v2886_v15  ;;  %v1511_v1 = vpop.f32.mrb[83].mxu0  ;;  %2027 = vmatpush1.bf16.xpose.msra.mxu1 %v2026_v51 }
 0x328   : > { %v1512_v2 = vadd.f32 %v1511_v1, %v2889_v16 }
 0x329   : > { %v1600_v7 = vmax.f32 %v1510_v63, 0.0 }
 0x32a   : > { %v1601_v12 = vmax.f32 %v1512_v2, 0.0  ;;  %v1515_v29 = vpop.f32.mrb[84].mxu0 }
 0x32b   : > { %v2030_v50 = vpack.c.bf16 %v1600_v7, %v1598_v5  ;;  %v1517_v48 = vpop.f32.mrb[85].mxu0  ;;  %v1516_v20 = vadd.f32 %v1515_v29, %v2886_v15 }
 0x32c   : > { %v2028_v17 = vpack.c.bf16 %v1601_v12, %v1599_v11  ;;  %v1518_v22 = vadd.f32 %v1517_v48, %v2889_v16 }
 0x32d   : > { %v1602_v30 = vmax.f32 %v1516_v20, 0.0 }
 0x32e   : > { %v1521_v23 = vpop.f32.mrb[86].mxu0  ;;  %2029 = vmatprep.subr.bf16.mxu1 %v2028_v17  ;;  %v1603_v31 = vmax.f32 %v1518_v22, 0.0 }
 0x32f   : > { %v1522_v6 = vadd.f32 %v1521_v23, %v2886_v15  ;;  %v1523_v8 = vpop.f32.mrb[87].mxu0  ;;  %2031 = vmatpush1.bf16.xpose.msra.mxu1 %v2030_v50 }
 0x330   : > { %v1524_v27 = vadd.f32 %v1523_v8, %v2889_v16 }
 0x331   : > { %v1604_v9 = vmax.f32 %v1522_v6, 0.0 }
 0x332   : > { %v1605_v10 = vmax.f32 %v1524_v27, 0.0  ;;  %v1527_v52 = vpop.f32.mrb[88].mxu0 }
 0x333   : > { %v2034_v28 = vpack.c.bf16 %v1604_v9, %v1602_v30  ;;  %v1529_v4 = vpop.f32.mrb[89].mxu0  ;;  %v1528_v34 = vadd.f32 %v1527_v52, %v2886_v15 }
 0x334   : > { %v2032_v47 = vpack.c.bf16 %v1605_v10, %v1603_v31  ;;  %v1530_v24 = vadd.f32 %v1529_v4, %v2889_v16 }
 0x335   : > { %v1606_v19 = vmax.f32 %v1528_v34, 0.0 }
 0x336   : > { %v1533_v35 = vpop.f32.mrb[90].mxu0  ;;  %2033 = vmatprep.subr.bf16.mxu1 %v2032_v47  ;;  %v1607_v41 = vmax.f32 %v1530_v24, 0.0 }
 0x337   : > { %v1534_v62 = vadd.f32 %v1533_v35, %v2886_v15  ;;  %v1535_v42 = vpop.f32.mrb[91].mxu0  ;;  %2035 = vmatpush1.bf16.xpose.msra.mxu1 %v2034_v28 }
 0x338   : > { %v1536_v38 = vadd.f32 %v1535_v42, %v2889_v16 }
 0x339   : > { %v1608_v40 = vmax.f32 %v1534_v62, 0.0 }
 0x33a   : > { %v1609_v60 = vmax.f32 %v1536_v38, 0.0  ;;  %v1539_v37 = vpop.f32.mrb[92].mxu0 }
 0x33b   : > { %v2038_v43 = vpack.c.bf16 %v1608_v40, %v1606_v19  ;;  %v1541_v18 = vpop.f32.mrb[93].mxu0  ;;  %v1540_v45 = vadd.f32 %v1539_v37, %v2886_v15 }
 0x33c   : > { %v2036_v55 = vpack.c.bf16 %v1609_v60, %v1607_v41  ;;  %v1542_v46 = vadd.f32 %v1541_v18, %v2889_v16 }
 0x33d   : > { %v1610_v33 = vmax.f32 %v1540_v45, 0.0 }
 0x33e   : > { %v1545_v39 = vpop.f32.mrb[94].mxu0  ;;  %2037 = vmatprep.subr.bf16.mxu1 %v2036_v55  ;;  %v1611_v53 = vmax.f32 %v1542_v46, 0.0 }
 0x33f   : > { %v1546_v13 = vadd.f32 %v1545_v39, %v2886_v15  ;;  %v1547_v49 = vpop.f32.mrb[95].mxu0  ;;  %2039 = vmatpush1.bf16.xpose.msra.mxu1 %v2038_v43 }
 0x340   : > { %v1548_v59 = vadd.f32 %v1547_v49, %v2889_v16 }
 0x341   : > { %v1612_v21 = vmax.f32 %v1546_v13, 0.0 }
 0x342   : > { %v1613_v44 = vmax.f32 %v1548_v59, 0.0 }
 0x343   : > { %v2042_v14 = vpack.c.bf16 %v1612_v21, %v1610_v33 }
 0x344   : > { %v2040_v3 = vpack.c.bf16 %v1613_v44, %v1611_v53 }
 0x346   : > { %2041 = vmatprep.subr.bf16.mxu1 %v2040_v3 }
 0x347   : > { %2043 = vmatpush1.bf16.xpose.msra.mxu1 %v2042_v14 }
 0x34e   : > { %1697 = vmatmul.mubr.f32.vlgmr.msra.gmra.mrb[96].mxu1 %v2897_v26 }
 0x421   : > { %v1698_v15 = vpop.f32.mrb[96].mxu1 }
 0x422   : > { %v1699_v32 = vadd.f32 %v1698_v15, %v1619_v36  ;;  %v1700_v61 = vpop.f32.mrb[97].mxu1 }
 0x423   : > { %v1701_v16 = vadd.f32 %v1700_v61, %v1619_v36 }
 0x425   : > { %v1705_v25 = vcombine.low %v1699_v32, %v1701_v16 }
 0x427   : > { %1845 = vst.sshfl [vmem:[%s341_s14] sm:$0x33 pattern:$0x76325410] %v1705_v25 }
 0x428   : > { %2142 = shalt.err (!%p2139_p7)
}
 0x429   : > { %s2143_s23 = scalar_lea.hbm %s2971_s29, 64  ;;  %s2147_s14 = scalar_lea.hbm %s3022_s9, 128 }
 0x42a   : > { %p2144_p8 = scmp.ne.s32.totalorder %s2971_s29, %s2143_s23  ;;  %p2148_p1 = scmp.lt.u32.totalorder %s2971_s29, %s3022_s9 }
 0x42b   : > { %p2149_p0 = scmp.lt.u32.totalorder %s2147_s14, %s2143_s23  ;;  %p2151_p6 = scmp.lt.u32.totalorder %s2143_s23, %s2971_s29 }
 0x42c   : > { %p2145_p11 = pnand %p2144_p8, %p3033_p9 }
 0x42d   : > { %p2150_p5 = por %p2149_p0, %p2148_p1 }
 0x42e   : > { %p2146_p13 = pneg %p2145_p11 }
 0x42f   : > { %p2152_p10 = por %p2151_p6, %p2150_p5 }
 0x431   : > { %p2153_p12 = pnand %p2152_p10, %p2146_p13 }
 0x433   : > { %2156 = shalt.err (!%p2153_p12)
}
 0x434   : > { %2050 = dma.vmem_to_hbm [thread:$0]  (%p3033_p9), %s2973_s16, 64, %s2971_s29, %s1716_s25  }
 0x435 PF: > { %p2062_p2 = scmp.ge.s32.totalorder %s2195_s12, 2  ;;  %s1742_s26 = sand.u32 1, %s2183_s30  }
 0x436   : > { %p3034_p3 = scmp.ne.s32.totalorder %s3027_s20, 0  ;;  %s1743_s13 = scalar_lea.sflag [#allocation4], %s1742_s26 }
 0x438   : > { %p2057_p4 = pnand %p2062_p2, %p3034_p3 }
 0x43a   : > { %2178 = dma.done.wait (!%p2057_p4), %s1743_s13, 64  }
 0x43b   : > { %2180 = vsyncadd (!%p2057_p4), %s1743_s13, 4294967232  ;;  %p20_p7 = scmp.ge.s32.totalorder %s2278_s15, 4   ;;  %s3035_s30 = smov %s2187_s10 }
 0x43c   : > { %s3036_s10 = smov %s2191_s11  ;;  %s3037_s11 = smov %s2289_s18 }
 0x43d   : > { %s3038_s12 = smov %s2278_s15  ;;  %22 = sbr.rel (!%p20_p7) target bundleno = 4 (0x4), region = 96 }
 0x444   :  { %1748 = vsyncpa [#allocation3], 1 }
 0x445   :  { %1750 = vsyncpa [#allocation3 + $0x1], 1 }
 0x446   :  { %1751 = vsyncpa [#allocation4], 1 }
 0x447   :  { %1753 = vsyncpa [#allocation4 + $0x1], 1 }

</bundles_post_ra>
